<compile_context>
chip_gen: v6e
topology: v6e:2x2x1
jax: 0.10.0
libtpu: 0.0.40
codegen_flags: <defaults>
</compile_context>

<pallas_src>
import functools
import math
from dataclasses import dataclass

import jax
import jax.numpy as jnp
from jax.experimental import pallas as pl
from jax.experimental.pallas import tpu as pltpu  # noqa: F401  (kept for CORE_PARALLEL variant)

F32 = jnp.float32
# Additive mask value; exp() underflows to exactly 0, matching torch's
# masked_fill_(-inf) followed by softmax.
NEG_INF = -1e30
_HI = jax.lax.Precision.HIGHEST


@dataclass(frozen=True)
class PclConfig:
    hidden_size: int = 32
    num_attention_heads: int = 4
    global_attention: int = 4
    chunk_size: int = 4
    intermediate_size: int = 64
    num_hidden_layers: int = 2
    batch_norm_eps: float = 1e-5
    hidden_act: str = "gelu_new"      # tanh-approx GELU
    hidden_dropout_prob: float = 0.0  # inference: dropout == identity


# ---------------------------------------------------------------------------
# Fused whole-encoder Pallas kernel (no grid: one invocation does everything)
# ---------------------------------------------------------------------------

def _gelu_new(x):
    c = math.sqrt(2.0 / math.pi)
    return 0.5 * x * (1.0 + jnp.tanh(c * (x + 0.044715 * x * x * x)))


def _pcl_encoder_kernel(x_ref, mask_ref, wqkv_ref, bqkv_ref, wo_ref, wi_ref,
                        bi_ref, wf_ref, hv_ref, o_ref,
                        *, num_layers, num_heads, head_dim, scale):
    """Entire encoder fused: both layers, all heads, whole batch."""
    H = num_heads * head_dim
    x = x_ref[...]        # (B*S, H)  flattened hidden states
    mask = mask_ref[...]  # (B*S, B*S) block-diagonal + global/local additive mask

    for l in range(num_layers):          # static unrolled layer loop
        # Fused QKV projection over the whole batch: (B*S,H) @ (H,3H) + bias.
        qkv = jnp.dot(x, wqkv_ref[l], preferred_element_type=F32) + bqkv_ref[l]

        # Per-head attention.  dh=8 < 128 so a few small lane slices are
        # unavoidable; they hide under MXU slack at these shapes.
        ctx_heads = []
        for h in range(num_heads):
            lo = h * head_dim
            hi = lo + head_dim
            q_h = qkv[:, lo:hi]                   # (B*S, dh)
            k_h = qkv[:, H + lo:H + hi]           # (B*S, dh)
            v_h = qkv[:, 2 * H + lo:2 * H + hi]   # (B*S, dh)

            s = jax.lax.dot_general(q_h, k_h, (((1,), (1,)), ((), ())),
                                    preferred_element_type=F32) * scale + mask
            s = s - jnp.max(s, axis=-1, keepdims=True)
            p = jnp.exp(s)
            p = p * pl.reciprocal(jnp.sum(p, axis=-1, keepdims=True), approx=True)
            ctx_heads.append(jnp.dot(p, v_h, preferred_element_type=F32))

        # One output-dense matmul over all heads (lane-concat the contexts).
        ctx = jnp.concatenate(ctx_heads, axis=-1)            # (B*S, H)

        hv = hv_ref[l]    # (6, H): [bo, bn1_scale, bn1_shift, bf, bn2_scale, bn2_shift]
        a = jnp.dot(ctx, wo_ref[l], preferred_element_type=F32) + hv[0:1, :]

        # PclSelfOutput: (dropout = id) + residual + folded eval-mode BatchNorm.
        attn_out = (a + x) * hv[1:2, :] + hv[2:3, :]

        # PclIntermediate (gelu_new) + PclOutput (dense + residual + BatchNorm).
        inter = _gelu_new(
            jnp.dot(attn_out, wi_ref[l], preferred_element_type=F32) + bi_ref[l])
        ff = jnp.dot(inter, wf_ref[l], preferred_element_type=F32) + hv[3:4, :]
        x = (ff + attn_out) * hv[4:5, :] + hv[5:6, :]

    # Output last dim is H=32 (< 128 lanes) -> masked stores; negligible at
    # this size.  If S or H grows, present a lane-dense (>=128) output slab.
    o_ref[...] = x


# ---------------------------------------------------------------------------
# Host-side glue: mask construction, one-time param packing, pallas_call
# ---------------------------------------------------------------------------

def build_attention_mask(cluster_ids, cfg, seq_len):
    """Additive (B*S, B*S) block-diagonal mask equivalent to PclSelfAttention's
    global + local chunked scheme (built once per forward; shared across all
    layers and heads)."""
    B, P = cluster_ids.shape
    G = cfg.global_attention
    C = cfg.chunk_size
    assert P % C == 0, "local token count must be a multiple of chunk_size"
    nc = P // C
    assert nc >= 2, "full-key mask reformulation assumes >= 2 local chunks"

    chunk_id = jnp.arange(P, dtype=jnp.int32) // C
    same_or_next = (chunk_id[None, :] == chunk_id[:, None]) | (
        chunk_id[None, :] == (chunk_id[:, None] + 1) % nc)
    same_cluster = cluster_ids[:, :, None] == cluster_ids[:, None, :]   # (B,P,P)
    local_ok = same_or_next[None, :, :] & same_cluster
    m_local = jnp.where(local_ok, 0.0, NEG_INF).astype(F32)

    per_batch = jnp.zeros((B, seq_len, seq_len), F32)
    # global queries (rows < G) and global keys (cols < G) stay unmasked.
    per_batch = per_batch.at[:, G:, G:].set(m_local)

    # Block-diagonalise over the batch: queries of batch b only see keys of b.
    eye = jnp.eye(B, dtype=bool)
    big = jnp.where(eye[:, None, :, None], per_batch[:, :, None, :], NEG_INF)
    return big.reshape(B * seq_len, B * seq_len)


def prepare_packed_params(params, cfg):
    """One-time parameter prep: concat QKV, stack over layers, pack the six
    H-wide bias/BN vectors into one slab (hoisted out of the forward pass)."""
    H, I = cfg.hidden_size, cfg.intermediate_size
    wqkv = jnp.stack([jnp.concatenate([p["wq"], p["wk"], p["wv"]], axis=1)
                      for p in params])                                   # (L,H,3H)
    bqkv = jnp.stack([jnp.concatenate([p["bq"], p["bk"], p["bv"]]).reshape(1, 3 * H)
                      for p in params])                                   # (L,1,3H)
    wo = jnp.stack([p["wo_a"] for p in params])                           # (L,H,H)
    wi = jnp.stack([p["wi"] for p in params])                             # (L,H,I)
    bi = jnp.stack([p["bi"].reshape(1, I) for p in params])               # (L,1,I)
    wf = jnp.stack([p["wo_f"] for p in params])                           # (L,I,H)
    hvecs = jnp.stack([jnp.concatenate([
        p["bo_a"].reshape(1, H),
        p["bn1_scale"].reshape(1, H), p["bn1_shift"].reshape(1, H),
        p["bo_f"].reshape(1, H),
        p["bn2_scale"].reshape(1, H), p["bn2_shift"].reshape(1, H)],
        axis=0) for p in params])                                         # (L,6,H)
    return dict(wqkv=wqkv, bqkv=bqkv, wo=wo, wi=wi, bi=bi, wf=wf, hvecs=hvecs)


@functools.partial(jax.jit, static_argnums=(3,))
def pallas_encoder_forward(packed, hidden, cluster_ids, cfg):
    B, S, H = hidden.shape
    nh = cfg.num_attention_heads
    dh = H // nh
    scale = 1.0 / math.sqrt(dh)

    mask = build_attention_mask(cluster_ids, cfg, S)
    x2 = hidden.reshape(B * S, H)

    kern = functools.partial(_pcl_encoder_kernel,
                             num_layers=cfg.num_hidden_layers,
                             num_heads=nh, head_dim=dh, scale=scale)

    # No grid: one invocation, every operand one full-array VMEM block
    # (total resident footprint < 100 KB -> trivially fits on every chip).
    out = pl.pallas_call(
        kern,
        out_shape=jax.ShapeDtypeStruct((B * S, H), F32),
    )(x2, mask, packed["wqkv"], packed["bqkv"], packed["wo"], packed["wi"],
      packed["bi"], packed["wf"], packed["hvecs"])
    return out.reshape(B, S, H)


# ---------------------------------------------------------------------------
# Pure-JAX reference (mirrors the torch module structure: separate global /
# local attention with roll + concat).  Used only for verification.
# ---------------------------------------------------------------------------

def _ref_attention_block(p, hidden, cluster_ids, cfg):
    B, S, H = hidden.shape
    nh = cfg.num_attention_heads
    dh = H // nh
    G = cfg.global_attention
    C = cfg.chunk_size
    P = S - G
    nc = P // C
    scale = 1.0 / math.sqrt(dh)
    x2 = hidden.reshape(B * S, H)

    def proj(w, b):
        y = jnp.dot(x2, w, precision=_HI) + b[None, :]
        return y.reshape(B, S, nh, dh).transpose(0, 2, 1, 3)   # (B, nh, S, dh)

    q = proj(p["wq"], p["bq"])
    k = proj(p["wk"], p["bk"])
    v = proj(p["wv"], p["bv"])

    # global attention: first G queries attend to all S keys
    sg = jnp.einsum("bhqd,bhkd->bhqk", q[:, :, :G, :], k, precision=_HI) * scale
    pg = jax.nn.softmax(sg, axis=-1)
    ctx_g = jnp.einsum("bhqk,bhkd->bhqd", pg, v, precision=_HI)

    # local chunked attention
    ql = q[:, :, G:, :].reshape(B, nh, nc, C, dh)
    kl = k[:, :, G:, :].reshape(B, nh, nc, C, dh)
    vl = v[:, :, G:, :].reshape(B, nh, nc, C, dh)
    kg = jnp.broadcast_to(k[:, :, None, :G, :], (B, nh, nc, G, dh))
    vg = jnp.broadcast_to(v[:, :, None, :G, :], (B, nh, nc, G, dh))
    k_cat = jnp.concatenate([kg, jnp.roll(kl, -1, axis=2), kl], axis=3)
    v_cat = jnp.concatenate([vg, jnp.roll(vl, -1, axis=2), vl], axis=3)
    s_l = jnp.einsum("bhncd,bhnkd->bhnck", ql, k_cat, precision=_HI) * scale

    qc = cluster_ids.reshape(B, nc, C)
    kc = jnp.concatenate([jnp.roll(qc, -1, axis=1), qc], axis=-1)
    neq = qc[:, :, :, None] != kc[:, :, None, :]
    m_local = jnp.where(neq, NEG_INF, 0.0).astype(F32)
    m = jnp.concatenate([jnp.zeros((B, nc, C, G), F32), m_local], axis=-1)
    s_l = s_l + m[:, None]
    p_l = jax.nn.softmax(s_l, axis=-1)
    ctx_l = jnp.einsum("bhnck,bhnkd->bhncd", p_l, v_cat,
                       precision=_HI).reshape(B, nh, P, dh)

    ctx = jnp.concatenate([ctx_g, ctx_l], axis=2).transpose(0, 2, 1, 3)
    ctx = ctx.reshape(B * S, H)
    a = jnp.dot(ctx, p["wo_a"], precision=_HI) + p["bo_a"][None, :]
    return (a + x2) * p["bn1_scale"] + p["bn1_shift"]


def ref_layer_forward(p, hidden, cluster_ids, cfg):
    B, S, H = hidden.shape
    attn_out = _ref_attention_block(p, hidden, cluster_ids, cfg)
    inter = jnp.dot(attn_out, p["wi"], precision=_HI) + p["bi"][None, :]
    c = math.sqrt(2.0 / math.pi)
    inter = 0.5 * inter * (1.0 + jnp.tanh(c * (inter + 0.044715 * inter ** 3)))
    ff = jnp.dot(inter, p["wo_f"], precision=_HI) + p["bo_f"][None, :]
    return ((ff + attn_out) * p["bn2_scale"] + p["bn2_shift"]).reshape(B, S, H)


def ref_encoder_forward(params, hidden, cluster_ids, cfg):
    for p in params:
        hidden = ref_layer_forward(p, hidden, cluster_ids, cfg)
    return hidden


# ---------------------------------------------------------------------------
# Deterministic synthetic parameters
# ---------------------------------------------------------------------------

def init_params(key, cfg):
    H, I = cfg.hidden_size, cfg.intermediate_size
    eps = cfg.batch_norm_eps
    params = []

    def n(k, shape, s=0.05):
        return jax.random.normal(k, shape, F32) * s

    for layer in range(cfg.num_hidden_layers):
        ks = jax.random.split(jax.random.fold_in(key, layer), 20)

        def folded_bn(kg, kb, km, kv):
            gamma = 1.0 + n(kg, (H,), 0.1)
            beta = n(kb, (H,), 0.1)
            mean = n(km, (H,), 0.1)
            var = 0.5 + jax.random.uniform(kv, (H,), F32)
            scale = gamma / jnp.sqrt(var + eps)
            shift = beta - mean * scale
            return scale.reshape(1, H), shift.reshape(1, H)

        bn1_scale, bn1_shift = folded_bn(ks[8], ks[9], ks[10], ks[11])
        bn2_scale, bn2_shift = folded_bn(ks[16], ks[17], ks[18], ks[19])

        params.append(dict(
            wq=n(ks[0], (H, H)), bq=n(ks[1], (H,)),
            wk=n(ks[2], (H, H)), bk=n(ks[3], (H,)),
            wv=n(ks[4], (H, H)), bv=n(ks[5], (H,)),
            wo_a=n(ks[6], (H, H)), bo_a=n(ks[7], (H,)),
            bn1_scale=bn1_scale, bn1_shift=bn1_shift,
            wi=n(ks[12], (H, I)), bi=n(ks[13], (I,)),
            wo_f=n(ks[14], (I, H)), bo_f=n(ks[15], (H,)),
            bn2_scale=bn2_scale, bn2_shift=bn2_shift,
        ))
    return params


# ---------------------------------------------------------------------------

if __name__ == "__main__":
    cfg = PclConfig()
    B = 2
    P = 8                                  # local tokens (2 chunks of 4)
    S = cfg.global_attention + P           # 12 total tokens
    H = cfg.hidden_size

    key = jax.random.PRNGKey(0)
    k_h, k_c, k_p = jax.random.split(key, 3)
    hidden_states = jax.random.normal(k_h, (B, S, H), F32)
    cluster_ids = jax.random.randint(k_c, (B, P), 0, 3, dtype=jnp.int32)
    params = init_params(k_p, cfg)

    # One-time parameter packing (hoisted out of the forward pass).
    packed = prepare_packed_params(params, cfg)

    out = pallas_encoder_forward(packed, hidden_states, cluster_ids, cfg)
    out = jax.block_until_ready(out)
    assert out.shape == (B, S, H)

    ref = ref_encoder_forward(params, hidden_states, cluster_ids, cfg)
    ref = jax.block_until_ready(ref)
    if not jnp.allclose(out, ref, atol=2e-3, rtol=2e-3):
        err = float(jnp.max(jnp.abs(out - ref)))
        raise AssertionError(f"Pallas output mismatch vs reference, max abs err={err}")

    print("KERNEL_OK")
</pallas_src>

<mosaic_0001>
module attributes {stable_mosaic.version = 11 : i64} {
  func.func @_pcl_encoder_kernel(%arg0: memref<24x32xf32, #tpu.memory_space<vmem>>, %arg1: memref<24x24xf32, #tpu.memory_space<vmem>>, %arg2: memref<2x32x96xf32, #tpu.memory_space<vmem>>, %arg3: memref<2x1x96xf32, #tpu.memory_space<vmem>>, %arg4: memref<2x32x32xf32, #tpu.memory_space<vmem>>, %arg5: memref<2x32x64xf32, #tpu.memory_space<vmem>>, %arg6: memref<2x1x64xf32, #tpu.memory_space<vmem>>, %arg7: memref<2x64x32xf32, #tpu.memory_space<vmem>>, %arg8: memref<2x6x32xf32, #tpu.memory_space<vmem>>, %arg9: memref<24x32xf32, #tpu.memory_space<vmem>>) attributes {dimension_semantics = [], scalar_prefetch = 0 : i64, scratch_operands = 0 : i64, tpu.core_type = #tpu.core_type<tc>} {
    %c0 = arith.constant 0 : index
    %c0_0 = arith.constant 0 : index
    %0 = vector.load %arg0[%c0, %c0_0] : memref<24x32xf32, #tpu.memory_space<vmem>>, vector<24x32xf32>
    %c0_1 = arith.constant 0 : index
    %c0_2 = arith.constant 0 : index
    %1 = vector.load %arg1[%c0_1, %c0_2] : memref<24x24xf32, #tpu.memory_space<vmem>>, vector<24x24xf32>
    %c0_3 = arith.constant 0 : index
    %c0_4 = arith.constant 0 : index
    %c0_5 = arith.constant 0 : index
    %2 = vector.load %arg2[%c0_3, %c0_4, %c0_5] : memref<2x32x96xf32, #tpu.memory_space<vmem>>, vector<1x32x96xf32>
    %3 = vector.shape_cast %2 : vector<1x32x96xf32> to vector<32x96xf32>
    %cst = arith.constant dense<0.000000e+00> : vector<24x96xf32>
    %4 = tpu.matmul %0, %3, %cst {dimension_numbers = #tpu.dot_dimension_numbers<[1], [0], [0], [1], [0, 0, 1, 1], [], []>} : vector<24x32xf32>, vector<32x96xf32>, vector<24x96xf32> -> vector<24x96xf32>
    %c0_6 = arith.constant 0 : index
    %c0_7 = arith.constant 0 : index
    %c0_8 = arith.constant 0 : index
    %5 = vector.load %arg3[%c0_6, %c0_7, %c0_8] : memref<2x1x96xf32, #tpu.memory_space<vmem>>, vector<1x1x96xf32>
    %6 = vector.shape_cast %5 : vector<1x1x96xf32> to vector<1x96xf32>
    %7 = vector.broadcast %6 : vector<1x96xf32> to vector<24x96xf32>
    %8 = arith.addf %4, %7 : vector<24x96xf32>
    %9 = vector.extract_strided_slice %8 {offsets = [0, 0], sizes = [24, 8], strides = [1, 1]} : vector<24x96xf32> to vector<24x8xf32>
    %10 = vector.extract_strided_slice %8 {offsets = [0, 32], sizes = [24, 8], strides = [1, 1]} : vector<24x96xf32> to vector<24x8xf32>
    %11 = vector.extract_strided_slice %8 {offsets = [0, 64], sizes = [24, 8], strides = [1, 1]} : vector<24x96xf32> to vector<24x8xf32>
    %cst_9 = arith.constant dense<0.000000e+00> : vector<24x24xf32>
    %12 = tpu.matmul %9, %10, %cst_9 {dimension_numbers = #tpu.dot_dimension_numbers<[1], [1], [0], [0], [0, 0, 1, 0], [], []>} : vector<24x8xf32>, vector<24x8xf32>, vector<24x24xf32> -> vector<24x24xf32>
    %cst_10 = arith.constant 0.353553385 : f32
    %13 = vector.broadcast %cst_10 : f32 to vector<24x24xf32>
    %14 = arith.mulf %12, %13 : vector<24x24xf32>
    %15 = arith.addf %14, %1 : vector<24x24xf32>
    %cst_11 = arith.constant dense<0xFF800000> : vector<24xf32>
    %16 = vector.multi_reduction <maximumf>, %15, %cst_11 [1] : vector<24x24xf32> to vector<24xf32>
    %17 = vector.shape_cast %16 : vector<24xf32> to vector<24x1xf32>
    %18 = vector.broadcast %17 : vector<24x1xf32> to vector<24x24xf32>
    %19 = arith.subf %15, %18 : vector<24x24xf32>
    %20 = math.exp %19 : vector<24x24xf32>
    %cst_12 = arith.constant dense<0.000000e+00> : vector<24xf32>
    %21 = vector.multi_reduction <add>, %20, %cst_12 [1] : vector<24x24xf32> to vector<24xf32>
    %22 = vector.shape_cast %21 : vector<24xf32> to vector<24x1xf32>
    %23 = tpu.reciprocal %22 {approx = true} : vector<24x1xf32> -> vector<24x1xf32>
    %24 = vector.broadcast %23 : vector<24x1xf32> to vector<24x24xf32>
    %25 = arith.mulf %20, %24 : vector<24x24xf32>
    %cst_13 = arith.constant dense<0.000000e+00> : vector<24x8xf32>
    %26 = tpu.matmul %25, %11, %cst_13 {dimension_numbers = #tpu.dot_dimension_numbers<[1], [0], [0], [1], [0, 0, 1, 1], [], []>} : vector<24x24xf32>, vector<24x8xf32>, vector<24x8xf32> -> vector<24x8xf32>
    %27 = vector.extract_strided_slice %8 {offsets = [0, 8], sizes = [24, 8], strides = [1, 1]} : vector<24x96xf32> to vector<24x8xf32>
    %28 = vector.extract_strided_slice %8 {offsets = [0, 40], sizes = [24, 8], strides = [1, 1]} : vector<24x96xf32> to vector<24x8xf32>
    %29 = vector.extract_strided_slice %8 {offsets = [0, 72], sizes = [24, 8], strides = [1, 1]} : vector<24x96xf32> to vector<24x8xf32>
    %cst_14 = arith.constant dense<0.000000e+00> : vector<24x24xf32>
    %30 = tpu.matmul %27, %28, %cst_14 {dimension_numbers = #tpu.dot_dimension_numbers<[1], [1], [0], [0], [0, 0, 1, 0], [], []>} : vector<24x8xf32>, vector<24x8xf32>, vector<24x24xf32> -> vector<24x24xf32>
    %cst_15 = arith.constant 0.353553385 : f32
    %31 = vector.broadcast %cst_15 : f32 to vector<24x24xf32>
    %32 = arith.mulf %30, %31 : vector<24x24xf32>
    %33 = arith.addf %32, %1 : vector<24x24xf32>
    %cst_16 = arith.constant dense<0xFF800000> : vector<24xf32>
    %34 = vector.multi_reduction <maximumf>, %33, %cst_16 [1] : vector<24x24xf32> to vector<24xf32>
    %35 = vector.shape_cast %34 : vector<24xf32> to vector<24x1xf32>
    %36 = vector.broadcast %35 : vector<24x1xf32> to vector<24x24xf32>
    %37 = arith.subf %33, %36 : vector<24x24xf32>
    %38 = math.exp %37 : vector<24x24xf32>
    %cst_17 = arith.constant dense<0.000000e+00> : vector<24xf32>
    %39 = vector.multi_reduction <add>, %38, %cst_17 [1] : vector<24x24xf32> to vector<24xf32>
    %40 = vector.shape_cast %39 : vector<24xf32> to vector<24x1xf32>
    %41 = tpu.reciprocal %40 {approx = true} : vector<24x1xf32> -> vector<24x1xf32>
    %42 = vector.broadcast %41 : vector<24x1xf32> to vector<24x24xf32>
    %43 = arith.mulf %38, %42 : vector<24x24xf32>
    %cst_18 = arith.constant dense<0.000000e+00> : vector<24x8xf32>
    %44 = tpu.matmul %43, %29, %cst_18 {dimension_numbers = #tpu.dot_dimension_numbers<[1], [0], [0], [1], [0, 0, 1, 1], [], []>} : vector<24x24xf32>, vector<24x8xf32>, vector<24x8xf32> -> vector<24x8xf32>
    %45 = vector.extract_strided_slice %8 {offsets = [0, 16], sizes = [24, 8], strides = [1, 1]} : vector<24x96xf32> to vector<24x8xf32>
    %46 = vector.extract_strided_slice %8 {offsets = [0, 48], sizes = [24, 8], strides = [1, 1]} : vector<24x96xf32> to vector<24x8xf32>
    %47 = vector.extract_strided_slice %8 {offsets = [0, 80], sizes = [24, 8], strides = [1, 1]} : vector<24x96xf32> to vector<24x8xf32>
    %cst_19 = arith.constant dense<0.000000e+00> : vector<24x24xf32>
    %48 = tpu.matmul %45, %46, %cst_19 {dimension_numbers = #tpu.dot_dimension_numbers<[1], [1], [0], [0], [0, 0, 1, 0], [], []>} : vector<24x8xf32>, vector<24x8xf32>, vector<24x24xf32> -> vector<24x24xf32>
    %cst_20 = arith.constant 0.353553385 : f32
    %49 = vector.broadcast %cst_20 : f32 to vector<24x24xf32>
    %50 = arith.mulf %48, %49 : vector<24x24xf32>
    %51 = arith.addf %50, %1 : vector<24x24xf32>
    %cst_21 = arith.constant dense<0xFF800000> : vector<24xf32>
    %52 = vector.multi_reduction <maximumf>, %51, %cst_21 [1] : vector<24x24xf32> to vector<24xf32>
    %53 = vector.shape_cast %52 : vector<24xf32> to vector<24x1xf32>
    %54 = vector.broadcast %53 : vector<24x1xf32> to vector<24x24xf32>
    %55 = arith.subf %51, %54 : vector<24x24xf32>
    %56 = math.exp %55 : vector<24x24xf32>
    %cst_22 = arith.constant dense<0.000000e+00> : vector<24xf32>
    %57 = vector.multi_reduction <add>, %56, %cst_22 [1] : vector<24x24xf32> to vector<24xf32>
    %58 = vector.shape_cast %57 : vector<24xf32> to vector<24x1xf32>
    %59 = tpu.reciprocal %58 {approx = true} : vector<24x1xf32> -> vector<24x1xf32>
    %60 = vector.broadcast %59 : vector<24x1xf32> to vector<24x24xf32>
    %61 = arith.mulf %56, %60 : vector<24x24xf32>
    %cst_23 = arith.constant dense<0.000000e+00> : vector<24x8xf32>
    %62 = tpu.matmul %61, %47, %cst_23 {dimension_numbers = #tpu.dot_dimension_numbers<[1], [0], [0], [1], [0, 0, 1, 1], [], []>} : vector<24x24xf32>, vector<24x8xf32>, vector<24x8xf32> -> vector<24x8xf32>
    %63 = vector.extract_strided_slice %8 {offsets = [0, 24], sizes = [24, 8], strides = [1, 1]} : vector<24x96xf32> to vector<24x8xf32>
    %64 = vector.extract_strided_slice %8 {offsets = [0, 56], sizes = [24, 8], strides = [1, 1]} : vector<24x96xf32> to vector<24x8xf32>
    %65 = vector.extract_strided_slice %8 {offsets = [0, 88], sizes = [24, 8], strides = [1, 1]} : vector<24x96xf32> to vector<24x8xf32>
    %cst_24 = arith.constant dense<0.000000e+00> : vector<24x24xf32>
    %66 = tpu.matmul %63, %64, %cst_24 {dimension_numbers = #tpu.dot_dimension_numbers<[1], [1], [0], [0], [0, 0, 1, 0], [], []>} : vector<24x8xf32>, vector<24x8xf32>, vector<24x24xf32> -> vector<24x24xf32>
    %cst_25 = arith.constant 0.353553385 : f32
    %67 = vector.broadcast %cst_25 : f32 to vector<24x24xf32>
    %68 = arith.mulf %66, %67 : vector<24x24xf32>
    %69 = arith.addf %68, %1 : vector<24x24xf32>
    %cst_26 = arith.constant dense<0xFF800000> : vector<24xf32>
    %70 = vector.multi_reduction <maximumf>, %69, %cst_26 [1] : vector<24x24xf32> to vector<24xf32>
    %71 = vector.shape_cast %70 : vector<24xf32> to vector<24x1xf32>
    %72 = vector.broadcast %71 : vector<24x1xf32> to vector<24x24xf32>
    %73 = arith.subf %69, %72 : vector<24x24xf32>
    %74 = math.exp %73 : vector<24x24xf32>
    %cst_27 = arith.constant dense<0.000000e+00> : vector<24xf32>
    %75 = vector.multi_reduction <add>, %74, %cst_27 [1] : vector<24x24xf32> to vector<24xf32>
    %76 = vector.shape_cast %75 : vector<24xf32> to vector<24x1xf32>
    %77 = tpu.reciprocal %76 {approx = true} : vector<24x1xf32> -> vector<24x1xf32>
    %78 = vector.broadcast %77 : vector<24x1xf32> to vector<24x24xf32>
    %79 = arith.mulf %74, %78 : vector<24x24xf32>
    %cst_28 = arith.constant dense<0.000000e+00> : vector<24x8xf32>
    %80 = tpu.matmul %79, %65, %cst_28 {dimension_numbers = #tpu.dot_dimension_numbers<[1], [0], [0], [1], [0, 0, 1, 1], [], []>} : vector<24x24xf32>, vector<24x8xf32>, vector<24x8xf32> -> vector<24x8xf32>
    %81 = tpu.concatenate %26, %44, %62, %80 in 1 : vector<24x8xf32>, vector<24x8xf32>, vector<24x8xf32>, vector<24x8xf32> -> vector<24x32xf32>
    %c0_29 = arith.constant 0 : index
    %c0_30 = arith.constant 0 : index
    %c0_31 = arith.constant 0 : index
    %82 = vector.load %arg8[%c0_29, %c0_30, %c0_31] : memref<2x6x32xf32, #tpu.memory_space<vmem>>, vector<1x6x32xf32>
    %83 = vector.shape_cast %82 : vector<1x6x32xf32> to vector<6x32xf32>
    %c0_32 = arith.constant 0 : index
    %c0_33 = arith.constant 0 : index
    %c0_34 = arith.constant 0 : index
    %84 = vector.load %arg4[%c0_32, %c0_33, %c0_34] : memref<2x32x32xf32, #tpu.memory_space<vmem>>, vector<1x32x32xf32>
    %85 = vector.shape_cast %84 : vector<1x32x32xf32> to vector<32x32xf32>
    %cst_35 = arith.constant dense<0.000000e+00> : vector<24x32xf32>
    %86 = tpu.matmul %81, %85, %cst_35 {dimension_numbers = #tpu.dot_dimension_numbers<[1], [0], [0], [1], [0, 0, 1, 1], [], []>} : vector<24x32xf32>, vector<32x32xf32>, vector<24x32xf32> -> vector<24x32xf32>
    %87 = vector.extract_strided_slice %83 {offsets = [0, 0], sizes = [1, 32], strides = [1, 1]} : vector<6x32xf32> to vector<1x32xf32>
    %88 = vector.broadcast %87 : vector<1x32xf32> to vector<24x32xf32>
    %89 = arith.addf %86, %88 : vector<24x32xf32>
    %90 = arith.addf %89, %0 : vector<24x32xf32>
    %91 = vector.extract_strided_slice %83 {offsets = [1, 0], sizes = [1, 32], strides = [1, 1]} : vector<6x32xf32> to vector<1x32xf32>
    %92 = vector.broadcast %91 : vector<1x32xf32> to vector<24x32xf32>
    %93 = arith.mulf %90, %92 : vector<24x32xf32>
    %94 = vector.extract_strided_slice %83 {offsets = [2, 0], sizes = [1, 32], strides = [1, 1]} : vector<6x32xf32> to vector<1x32xf32>
    %95 = vector.broadcast %94 : vector<1x32xf32> to vector<24x32xf32>
    %96 = arith.addf %93, %95 : vector<24x32xf32>
    %c0_36 = arith.constant 0 : index
    %c0_37 = arith.constant 0 : index
    %c0_38 = arith.constant 0 : index
    %97 = vector.load %arg5[%c0_36, %c0_37, %c0_38] : memref<2x32x64xf32, #tpu.memory_space<vmem>>, vector<1x32x64xf32>
    %98 = vector.shape_cast %97 : vector<1x32x64xf32> to vector<32x64xf32>
    %cst_39 = arith.constant dense<0.000000e+00> : vector<24x64xf32>
    %99 = tpu.matmul %96, %98, %cst_39 {dimension_numbers = #tpu.dot_dimension_numbers<[1], [0], [0], [1], [0, 0, 1, 1], [], []>} : vector<24x32xf32>, vector<32x64xf32>, vector<24x64xf32> -> vector<24x64xf32>
    %c0_40 = arith.constant 0 : index
    %c0_41 = arith.constant 0 : index
    %c0_42 = arith.constant 0 : index
    %100 = vector.load %arg6[%c0_40, %c0_41, %c0_42] : memref<2x1x64xf32, #tpu.memory_space<vmem>>, vector<1x1x64xf32>
    %101 = vector.shape_cast %100 : vector<1x1x64xf32> to vector<1x64xf32>
    %102 = vector.broadcast %101 : vector<1x64xf32> to vector<24x64xf32>
    %103 = arith.addf %99, %102 : vector<24x64xf32>
    %cst_43 = arith.constant 5.000000e-01 : f32
    %104 = vector.broadcast %cst_43 : f32 to vector<24x64xf32>
    %105 = arith.mulf %104, %103 : vector<24x64xf32>
    %cst_44 = arith.constant 4.471500e-02 : f32
    %106 = vector.broadcast %cst_44 : f32 to vector<24x64xf32>
    %107 = arith.mulf %106, %103 : vector<24x64xf32>
    %108 = arith.mulf %107, %103 : vector<24x64xf32>
    %109 = arith.mulf %108, %103 : vector<24x64xf32>
    %110 = arith.addf %103, %109 : vector<24x64xf32>
    %cst_45 = arith.constant 0.797884583 : f32
    %111 = vector.broadcast %cst_45 : f32 to vector<24x64xf32>
    %112 = arith.mulf %111, %110 : vector<24x64xf32>
    %113 = math.tanh %112 : vector<24x64xf32>
    %cst_46 = arith.constant 1.000000e+00 : f32
    %114 = vector.broadcast %cst_46 : f32 to vector<24x64xf32>
    %115 = arith.addf %114, %113 : vector<24x64xf32>
    %116 = arith.mulf %105, %115 : vector<24x64xf32>
    %c0_47 = arith.constant 0 : index
    %c0_48 = arith.constant 0 : index
    %c0_49 = arith.constant 0 : index
    %117 = vector.load %arg7[%c0_47, %c0_48, %c0_49] : memref<2x64x32xf32, #tpu.memory_space<vmem>>, vector<1x64x32xf32>
    %118 = vector.shape_cast %117 : vector<1x64x32xf32> to vector<64x32xf32>
    %cst_50 = arith.constant dense<0.000000e+00> : vector<24x32xf32>
    %119 = tpu.matmul %116, %118, %cst_50 {dimension_numbers = #tpu.dot_dimension_numbers<[1], [0], [0], [1], [0, 0, 1, 1], [], []>} : vector<24x64xf32>, vector<64x32xf32>, vector<24x32xf32> -> vector<24x32xf32>
    %120 = vector.extract_strided_slice %83 {offsets = [3, 0], sizes = [1, 32], strides = [1, 1]} : vector<6x32xf32> to vector<1x32xf32>
    %121 = vector.broadcast %120 : vector<1x32xf32> to vector<24x32xf32>
    %122 = arith.addf %119, %121 : vector<24x32xf32>
    %123 = arith.addf %122, %96 : vector<24x32xf32>
    %124 = vector.extract_strided_slice %83 {offsets = [4, 0], sizes = [1, 32], strides = [1, 1]} : vector<6x32xf32> to vector<1x32xf32>
    %125 = vector.broadcast %124 : vector<1x32xf32> to vector<24x32xf32>
    %126 = arith.mulf %123, %125 : vector<24x32xf32>
    %127 = vector.extract_strided_slice %83 {offsets = [5, 0], sizes = [1, 32], strides = [1, 1]} : vector<6x32xf32> to vector<1x32xf32>
    %128 = vector.broadcast %127 : vector<1x32xf32> to vector<24x32xf32>
    %129 = arith.addf %126, %128 : vector<24x32xf32>
    %c1 = arith.constant 1 : index
    %c0_51 = arith.constant 0 : index
    %c0_52 = arith.constant 0 : index
    %130 = vector.load %arg2[%c1, %c0_51, %c0_52] : memref<2x32x96xf32, #tpu.memory_space<vmem>>, vector<1x32x96xf32>
    %131 = vector.shape_cast %130 : vector<1x32x96xf32> to vector<32x96xf32>
    %cst_53 = arith.constant dense<0.000000e+00> : vector<24x96xf32>
    %132 = tpu.matmul %129, %131, %cst_53 {dimension_numbers = #tpu.dot_dimension_numbers<[1], [0], [0], [1], [0, 0, 1, 1], [], []>} : vector<24x32xf32>, vector<32x96xf32>, vector<24x96xf32> -> vector<24x96xf32>
    %c1_54 = arith.constant 1 : index
    %c0_55 = arith.constant 0 : index
    %c0_56 = arith.constant 0 : index
    %133 = vector.load %arg3[%c1_54, %c0_55, %c0_56] : memref<2x1x96xf32, #tpu.memory_space<vmem>>, vector<1x1x96xf32>
    %134 = vector.shape_cast %133 : vector<1x1x96xf32> to vector<1x96xf32>
    %135 = vector.broadcast %134 : vector<1x96xf32> to vector<24x96xf32>
    %136 = arith.addf %132, %135 : vector<24x96xf32>
    %137 = vector.extract_strided_slice %136 {offsets = [0, 0], sizes = [24, 8], strides = [1, 1]} : vector<24x96xf32> to vector<24x8xf32>
    %138 = vector.extract_strided_slice %136 {offsets = [0, 32], sizes = [24, 8], strides = [1, 1]} : vector<24x96xf32> to vector<24x8xf32>
    %139 = vector.extract_strided_slice %136 {offsets = [0, 64], sizes = [24, 8], strides = [1, 1]} : vector<24x96xf32> to vector<24x8xf32>
    %cst_57 = arith.constant dense<0.000000e+00> : vector<24x24xf32>
    %140 = tpu.matmul %137, %138, %cst_57 {dimension_numbers = #tpu.dot_dimension_numbers<[1], [1], [0], [0], [0, 0, 1, 0], [], []>} : vector<24x8xf32>, vector<24x8xf32>, vector<24x24xf32> -> vector<24x24xf32>
    %cst_58 = arith.constant 0.353553385 : f32
    %141 = vector.broadcast %cst_58 : f32 to vector<24x24xf32>
    %142 = arith.mulf %140, %141 : vector<24x24xf32>
    %143 = arith.addf %142, %1 : vector<24x24xf32>
    %cst_59 = arith.constant dense<0xFF800000> : vector<24xf32>
    %144 = vector.multi_reduction <maximumf>, %143, %cst_59 [1] : vector<24x24xf32> to vector<24xf32>
    %145 = vector.shape_cast %144 : vector<24xf32> to vector<24x1xf32>
    %146 = vector.broadcast %145 : vector<24x1xf32> to vector<24x24xf32>
    %147 = arith.subf %143, %146 : vector<24x24xf32>
    %148 = math.exp %147 : vector<24x24xf32>
    %cst_60 = arith.constant dense<0.000000e+00> : vector<24xf32>
    %149 = vector.multi_reduction <add>, %148, %cst_60 [1] : vector<24x24xf32> to vector<24xf32>
    %150 = vector.shape_cast %149 : vector<24xf32> to vector<24x1xf32>
    %151 = tpu.reciprocal %150 {approx = true} : vector<24x1xf32> -> vector<24x1xf32>
    %152 = vector.broadcast %151 : vector<24x1xf32> to vector<24x24xf32>
    %153 = arith.mulf %148, %152 : vector<24x24xf32>
    %cst_61 = arith.constant dense<0.000000e+00> : vector<24x8xf32>
    %154 = tpu.matmul %153, %139, %cst_61 {dimension_numbers = #tpu.dot_dimension_numbers<[1], [0], [0], [1], [0, 0, 1, 1], [], []>} : vector<24x24xf32>, vector<24x8xf32>, vector<24x8xf32> -> vector<24x8xf32>
    %155 = vector.extract_strided_slice %136 {offsets = [0, 8], sizes = [24, 8], strides = [1, 1]} : vector<24x96xf32> to vector<24x8xf32>
    %156 = vector.extract_strided_slice %136 {offsets = [0, 40], sizes = [24, 8], strides = [1, 1]} : vector<24x96xf32> to vector<24x8xf32>
    %157 = vector.extract_strided_slice %136 {offsets = [0, 72], sizes = [24, 8], strides = [1, 1]} : vector<24x96xf32> to vector<24x8xf32>
    %cst_62 = arith.constant dense<0.000000e+00> : vector<24x24xf32>
    %158 = tpu.matmul %155, %156, %cst_62 {dimension_numbers = #tpu.dot_dimension_numbers<[1], [1], [0], [0], [0, 0, 1, 0], [], []>} : vector<24x8xf32>, vector<24x8xf32>, vector<24x24xf32> -> vector<24x24xf32>
    %cst_63 = arith.constant 0.353553385 : f32
    %159 = vector.broadcast %cst_63 : f32 to vector<24x24xf32>
    %160 = arith.mulf %158, %159 : vector<24x24xf32>
    %161 = arith.addf %160, %1 : vector<24x24xf32>
    %cst_64 = arith.constant dense<0xFF800000> : vector<24xf32>
    %162 = vector.multi_reduction <maximumf>, %161, %cst_64 [1] : vector<24x24xf32> to vector<24xf32>
    %163 = vector.shape_cast %162 : vector<24xf32> to vector<24x1xf32>
    %164 = vector.broadcast %163 : vector<24x1xf32> to vector<24x24xf32>
    %165 = arith.subf %161, %164 : vector<24x24xf32>
    %166 = math.exp %165 : vector<24x24xf32>
    %cst_65 = arith.constant dense<0.000000e+00> : vector<24xf32>
    %167 = vector.multi_reduction <add>, %166, %cst_65 [1] : vector<24x24xf32> to vector<24xf32>
    %168 = vector.shape_cast %167 : vector<24xf32> to vector<24x1xf32>
    %169 = tpu.reciprocal %168 {approx = true} : vector<24x1xf32> -> vector<24x1xf32>
    %170 = vector.broadcast %169 : vector<24x1xf32> to vector<24x24xf32>
    %171 = arith.mulf %166, %170 : vector<24x24xf32>
    %cst_66 = arith.constant dense<0.000000e+00> : vector<24x8xf32>
    %172 = tpu.matmul %171, %157, %cst_66 {dimension_numbers = #tpu.dot_dimension_numbers<[1], [0], [0], [1], [0, 0, 1, 1], [], []>} : vector<24x24xf32>, vector<24x8xf32>, vector<24x8xf32> -> vector<24x8xf32>
    %173 = vector.extract_strided_slice %136 {offsets = [0, 16], sizes = [24, 8], strides = [1, 1]} : vector<24x96xf32> to vector<24x8xf32>
    %174 = vector.extract_strided_slice %136 {offsets = [0, 48], sizes = [24, 8], strides = [1, 1]} : vector<24x96xf32> to vector<24x8xf32>
    %175 = vector.extract_strided_slice %136 {offsets = [0, 80], sizes = [24, 8], strides = [1, 1]} : vector<24x96xf32> to vector<24x8xf32>
    %cst_67 = arith.constant dense<0.000000e+00> : vector<24x24xf32>
    %176 = tpu.matmul %173, %174, %cst_67 {dimension_numbers = #tpu.dot_dimension_numbers<[1], [1], [0], [0], [0, 0, 1, 0], [], []>} : vector<24x8xf32>, vector<24x8xf32>, vector<24x24xf32> -> vector<24x24xf32>
    %cst_68 = arith.constant 0.353553385 : f32
    %177 = vector.broadcast %cst_68 : f32 to vector<24x24xf32>
    %178 = arith.mulf %176, %177 : vector<24x24xf32>
    %179 = arith.addf %178, %1 : vector<24x24xf32>
    %cst_69 = arith.constant dense<0xFF800000> : vector<24xf32>
    %180 = vector.multi_reduction <maximumf>, %179, %cst_69 [1] : vector<24x24xf32> to vector<24xf32>
    %181 = vector.shape_cast %180 : vector<24xf32> to vector<24x1xf32>
    %182 = vector.broadcast %181 : vector<24x1xf32> to vector<24x24xf32>
    %183 = arith.subf %179, %182 : vector<24x24xf32>
    %184 = math.exp %183 : vector<24x24xf32>
    %cst_70 = arith.constant dense<0.000000e+00> : vector<24xf32>
    %185 = vector.multi_reduction <add>, %184, %cst_70 [1] : vector<24x24xf32> to vector<24xf32>
    %186 = vector.shape_cast %185 : vector<24xf32> to vector<24x1xf32>
    %187 = tpu.reciprocal %186 {approx = true} : vector<24x1xf32> -> vector<24x1xf32>
    %188 = vector.broadcast %187 : vector<24x1xf32> to vector<24x24xf32>
    %189 = arith.mulf %184, %188 : vector<24x24xf32>
    %cst_71 = arith.constant dense<0.000000e+00> : vector<24x8xf32>
    %190 = tpu.matmul %189, %175, %cst_71 {dimension_numbers = #tpu.dot_dimension_numbers<[1], [0], [0], [1], [0, 0, 1, 1], [], []>} : vector<24x24xf32>, vector<24x8xf32>, vector<24x8xf32> -> vector<24x8xf32>
    %191 = vector.extract_strided_slice %136 {offsets = [0, 24], sizes = [24, 8], strides = [1, 1]} : vector<24x96xf32> to vector<24x8xf32>
    %192 = vector.extract_strided_slice %136 {offsets = [0, 56], sizes = [24, 8], strides = [1, 1]} : vector<24x96xf32> to vector<24x8xf32>
    %193 = vector.extract_strided_slice %136 {offsets = [0, 88], sizes = [24, 8], strides = [1, 1]} : vector<24x96xf32> to vector<24x8xf32>
    %cst_72 = arith.constant dense<0.000000e+00> : vector<24x24xf32>
    %194 = tpu.matmul %191, %192, %cst_72 {dimension_numbers = #tpu.dot_dimension_numbers<[1], [1], [0], [0], [0, 0, 1, 0], [], []>} : vector<24x8xf32>, vector<24x8xf32>, vector<24x24xf32> -> vector<24x24xf32>
    %cst_73 = arith.constant 0.353553385 : f32
    %195 = vector.broadcast %cst_73 : f32 to vector<24x24xf32>
    %196 = arith.mulf %194, %195 : vector<24x24xf32>
    %197 = arith.addf %196, %1 : vector<24x24xf32>
    %cst_74 = arith.constant dense<0xFF800000> : vector<24xf32>
    %198 = vector.multi_reduction <maximumf>, %197, %cst_74 [1] : vector<24x24xf32> to vector<24xf32>
    %199 = vector.shape_cast %198 : vector<24xf32> to vector<24x1xf32>
    %200 = vector.broadcast %199 : vector<24x1xf32> to vector<24x24xf32>
    %201 = arith.subf %197, %200 : vector<24x24xf32>
    %202 = math.exp %201 : vector<24x24xf32>
    %cst_75 = arith.constant dense<0.000000e+00> : vector<24xf32>
    %203 = vector.multi_reduction <add>, %202, %cst_75 [1] : vector<24x24xf32> to vector<24xf32>
    %204 = vector.shape_cast %203 : vector<24xf32> to vector<24x1xf32>
    %205 = tpu.reciprocal %204 {approx = true} : vector<24x1xf32> -> vector<24x1xf32>
    %206 = vector.broadcast %205 : vector<24x1xf32> to vector<24x24xf32>
    %207 = arith.mulf %202, %206 : vector<24x24xf32>
    %cst_76 = arith.constant dense<0.000000e+00> : vector<24x8xf32>
    %208 = tpu.matmul %207, %193, %cst_76 {dimension_numbers = #tpu.dot_dimension_numbers<[1], [0], [0], [1], [0, 0, 1, 1], [], []>} : vector<24x24xf32>, vector<24x8xf32>, vector<24x8xf32> -> vector<24x8xf32>
    %209 = tpu.concatenate %154, %172, %190, %208 in 1 : vector<24x8xf32>, vector<24x8xf32>, vector<24x8xf32>, vector<24x8xf32> -> vector<24x32xf32>
    %c1_77 = arith.constant 1 : index
    %c0_78 = arith.constant 0 : index
    %c0_79 = arith.constant 0 : index
    %210 = vector.load %arg8[%c1_77, %c0_78, %c0_79] : memref<2x6x32xf32, #tpu.memory_space<vmem>>, vector<1x6x32xf32>
    %211 = vector.shape_cast %210 : vector<1x6x32xf32> to vector<6x32xf32>
    %c1_80 = arith.constant 1 : index
    %c0_81 = arith.constant 0 : index
    %c0_82 = arith.constant 0 : index
    %212 = vector.load %arg4[%c1_80, %c0_81, %c0_82] : memref<2x32x32xf32, #tpu.memory_space<vmem>>, vector<1x32x32xf32>
    %213 = vector.shape_cast %212 : vector<1x32x32xf32> to vector<32x32xf32>
    %cst_83 = arith.constant dense<0.000000e+00> : vector<24x32xf32>
    %214 = tpu.matmul %209, %213, %cst_83 {dimension_numbers = #tpu.dot_dimension_numbers<[1], [0], [0], [1], [0, 0, 1, 1], [], []>} : vector<24x32xf32>, vector<32x32xf32>, vector<24x32xf32> -> vector<24x32xf32>
    %215 = vector.extract_strided_slice %211 {offsets = [0, 0], sizes = [1, 32], strides = [1, 1]} : vector<6x32xf32> to vector<1x32xf32>
    %216 = vector.broadcast %215 : vector<1x32xf32> to vector<24x32xf32>
    %217 = arith.addf %214, %216 : vector<24x32xf32>
    %218 = arith.addf %217, %129 : vector<24x32xf32>
    %219 = vector.extract_strided_slice %211 {offsets = [1, 0], sizes = [1, 32], strides = [1, 1]} : vector<6x32xf32> to vector<1x32xf32>
    %220 = vector.broadcast %219 : vector<1x32xf32> to vector<24x32xf32>
    %221 = arith.mulf %218, %220 : vector<24x32xf32>
    %222 = vector.extract_strided_slice %211 {offsets = [2, 0], sizes = [1, 32], strides = [1, 1]} : vector<6x32xf32> to vector<1x32xf32>
    %223 = vector.broadcast %222 : vector<1x32xf32> to vector<24x32xf32>
    %224 = arith.addf %221, %223 : vector<24x32xf32>
    %c1_84 = arith.constant 1 : index
    %c0_85 = arith.constant 0 : index
    %c0_86 = arith.constant 0 : index
    %225 = vector.load %arg5[%c1_84, %c0_85, %c0_86] : memref<2x32x64xf32, #tpu.memory_space<vmem>>, vector<1x32x64xf32>
    %226 = vector.shape_cast %225 : vector<1x32x64xf32> to vector<32x64xf32>
    %cst_87 = arith.constant dense<0.000000e+00> : vector<24x64xf32>
    %227 = tpu.matmul %224, %226, %cst_87 {dimension_numbers = #tpu.dot_dimension_numbers<[1], [0], [0], [1], [0, 0, 1, 1], [], []>} : vector<24x32xf32>, vector<32x64xf32>, vector<24x64xf32> -> vector<24x64xf32>
    %c1_88 = arith.constant 1 : index
    %c0_89 = arith.constant 0 : index
    %c0_90 = arith.constant 0 : index
    %228 = vector.load %arg6[%c1_88, %c0_89, %c0_90] : memref<2x1x64xf32, #tpu.memory_space<vmem>>, vector<1x1x64xf32>
    %229 = vector.shape_cast %228 : vector<1x1x64xf32> to vector<1x64xf32>
    %230 = vector.broadcast %229 : vector<1x64xf32> to vector<24x64xf32>
    %231 = arith.addf %227, %230 : vector<24x64xf32>
    %cst_91 = arith.constant 5.000000e-01 : f32
    %232 = vector.broadcast %cst_91 : f32 to vector<24x64xf32>
    %233 = arith.mulf %232, %231 : vector<24x64xf32>
    %cst_92 = arith.constant 4.471500e-02 : f32
    %234 = vector.broadcast %cst_92 : f32 to vector<24x64xf32>
    %235 = arith.mulf %234, %231 : vector<24x64xf32>
    %236 = arith.mulf %235, %231 : vector<24x64xf32>
    %237 = arith.mulf %236, %231 : vector<24x64xf32>
    %238 = arith.addf %231, %237 : vector<24x64xf32>
    %cst_93 = arith.constant 0.797884583 : f32
    %239 = vector.broadcast %cst_93 : f32 to vector<24x64xf32>
    %240 = arith.mulf %239, %238 : vector<24x64xf32>
    %241 = math.tanh %240 : vector<24x64xf32>
    %cst_94 = arith.constant 1.000000e+00 : f32
    %242 = vector.broadcast %cst_94 : f32 to vector<24x64xf32>
    %243 = arith.addf %242, %241 : vector<24x64xf32>
    %244 = arith.mulf %233, %243 : vector<24x64xf32>
    %c1_95 = arith.constant 1 : index
    %c0_96 = arith.constant 0 : index
    %c0_97 = arith.constant 0 : index
    %245 = vector.load %arg7[%c1_95, %c0_96, %c0_97] : memref<2x64x32xf32, #tpu.memory_space<vmem>>, vector<1x64x32xf32>
    %246 = vector.shape_cast %245 : vector<1x64x32xf32> to vector<64x32xf32>
    %cst_98 = arith.constant dense<0.000000e+00> : vector<24x32xf32>
    %247 = tpu.matmul %244, %246, %cst_98 {dimension_numbers = #tpu.dot_dimension_numbers<[1], [0], [0], [1], [0, 0, 1, 1], [], []>} : vector<24x64xf32>, vector<64x32xf32>, vector<24x32xf32> -> vector<24x32xf32>
    %248 = vector.extract_strided_slice %211 {offsets = [3, 0], sizes = [1, 32], strides = [1, 1]} : vector<6x32xf32> to vector<1x32xf32>
    %249 = vector.broadcast %248 : vector<1x32xf32> to vector<24x32xf32>
    %250 = arith.addf %247, %249 : vector<24x32xf32>
    %251 = arith.addf %250, %224 : vector<24x32xf32>
    %252 = vector.extract_strided_slice %211 {offsets = [4, 0], sizes = [1, 32], strides = [1, 1]} : vector<6x32xf32> to vector<1x32xf32>
    %253 = vector.broadcast %252 : vector<1x32xf32> to vector<24x32xf32>
    %254 = arith.mulf %251, %253 : vector<24x32xf32>
    %255 = vector.extract_strided_slice %211 {offsets = [5, 0], sizes = [1, 32], strides = [1, 1]} : vector<6x32xf32> to vector<1x32xf32>
    %256 = vector.broadcast %255 : vector<1x32xf32> to vector<24x32xf32>
    %257 = arith.addf %254, %256 : vector<24x32xf32>
    %c0_99 = arith.constant 0 : index
    %c0_100 = arith.constant 0 : index
    %258 = vector.load %arg9[%c0_99, %c0_100] : memref<24x32xf32, #tpu.memory_space<vmem>>, vector<24x32xf32>
    tpu.vector_store %arg9[%c0_99, %c0_100], %257 {strides = array<i32>} : memref<24x32xf32, #tpu.memory_space<vmem>>, vector<24x32xf32>,
    return
  }
}

</mosaic_0001>

<bundles_post_ra>
// kernel: pallas_encoder_forward.1
= control target key start
LH: loop header
LB: loop body
LE: loop exit
PB: predicated region body
PF: predicated region fallthrough
CT: control target
= control target key end

     0   :  { %v3800_v0 = vmov 0.0   ;;  %vm3801_vm0 = vmmov 0   ;;  %vm49_vm1 = vcmask 261120   ;;  %s3802_s25 = smov 96   ;;  %s3803_s26 = smov 88   ;;  %vm148_vm2 = vcmask 64512   ;;  %s4898_s2 = inlined_call_operand.vmem [shape: f32[2,32,96], index: 2, kind: input, shape index: {}]   ;;  %s4899_s0 = inlined_call_operand.vmem [shape: f32[24,32], index: 0, kind: input, shape index: {}]   ;;  %s4900_s3 = inlined_call_operand.vmem [shape: f32[2,1,96], index: 3, kind: input, shape index: {}]   ;;  %s4901_s1 = inlined_call_operand.vmem [shape: f32[24,24], index: 1, kind: input, shape index: {}]   ;;  %s4902_s4 = inlined_call_operand.vmem [shape: f32[2,32,32], index: 4, kind: input, shape index: {}]   ;;  %s4903_s5 = inlined_call_operand.vmem [shape: f32[2,32,64], index: 5, kind: input, shape index: {}]   ;;  %s4904_s8 = inlined_call_operand.vmem [shape: f32[2,6,32], index: 8, kind: input, shape index: {}]   ;;  %s4905_s7 = inlined_call_operand.vmem [shape: f32[2,64,32], index: 7, kind: input, shape index: {}]   ;;  %s4906_s6 = inlined_call_operand.vmem [shape: f32[2,1,64], index: 6, kind: input, shape index: {}]   ;;  %s4907_s9 = inlined_call_operand.vmem [shape: f32[24,32], index: 9, kind: output, shape index: {}]  }
   0x1   :  { %3272 = vmatprep.subr.mxu0 %v3800_v0  ;;  %v41_v1 = vld [vmem:[%s4898_s2 + $0x18] sm:$0xff]  ;;  %v40_v2 = vld [vmem:[%s4898_s2 + $0x10] sm:$0xff]  ;;  %3280 = vmatprep.mubr.msk.f32.mxu0 %vm3801_vm0, %v3800_v0  ;;  %v39_v3 = vld [vmem:[%s4898_s2 + $0x8] sm:$0xff]  ;;  %s3804_s27 = smov 80   ;;  %s3805_s28 = smov 120   ;;  %vm247_vm3 = vcmask 195584  }
   0x2   :  { %3273 = vmatpush3.msra.mxu0 %v41_v1  ;;  %3289 = vmatprep.subr.mxu1 %v3800_v0  ;;  %v38_v4 = vld [vmem:[%s4898_s2] sm:$0xff]  ;;  %v33_v6 = vld [vmem:[%s4899_s0 + $0x8] sm:$0xff]  ;;  %v34_v7 = vld [vmem:[%s4899_s0 + $0x10] sm:$0xff]  ;;  %s3806_s29 = smov 112   ;;  %s3807_s30 = smov 64   ;;  %vm1141_vm4 = vcmask 130048  }
   0x3   :  { %3274 = vmatprep.subr.mxu0 %v3800_v0  ;;  %3295 = vmatprep.mubr.msk.f32.mxu1 %vm3801_vm0, %v3800_v0  ;;  %v32_v5 = vld [vmem:[%s4899_s0] sm:$0xff]  ;;  %s3808_s10 = smov 56   ;;  %s3809_s11 = smov 48   ;;  %v4021_v43 = vld [vmem:[%s4901_s1 + $0x8] sm:$0xff]  ;;  %v4028_v49 = vld [vmem:[%s4901_s1 + $0x10] sm:$0xff]  ;;  %vm1402_vm5 = vcmask 523264  }
   0x4   :  { %3275 = vmatpush3.msra.mxu0 %v40_v2  ;;  %v2989_v8 = vld [vmem:[%s4900_s3] ss:$0 sm:$0xff]  ;;  %s3810_s18 = smov 72   ;;  %s3811_s19 = smov 104  }
   0x5   :  { %3276 = vmatprep.subr.mxu0 %v3800_v0  ;;  %v4015_v38 = vld [vmem:[%s4901_s1] sm:$0xff]  ;;  %s3812_s20 = smov 40   ;;  %s3813_s21 = smov 8  }
   0x6   :  { %3277 = vmatpush3.msra.mxu0 %v39_v3  ;;  %s3814_s22 = smov 16   ;;  %s3815_s12 = smov 24  }
   0x7   :  { %3278 = vmatprep.subr.mxu0 %v3800_v0 }
   0x8   :  { %3279 = vmatpush3.msra.mxu0 %v38_v4 }
   0x9   :  { %3281 = vmatmul.mubr.msk.f32.vlgmr.msra.gmra.mxu0 %vm49_vm1, %v32_v5  ;;  %3304 = vmatprep.subr.mxu0 %v3800_v0 }
   0xa   :  { %3283 = vmatprep.mubr.msk.f32.mxu0 %vm3801_vm0, %v3800_v0 }
   0xd   :  { %3284 = vmatmul.mubr.msk.f32.gmra.mxu0 %vm49_vm1, %v33_v6 }
   0xe   :  { %3286 = vmatprep.mubr.msk.f32.mxu0 %vm3801_vm0, %v3800_v0 }
  0x11   :  { %3287 = vmatmul.mubr.msk.f32.gmra.mxu0 %vm49_vm1, %v34_v7 }
  0x12   :  { %3310 = vmatprep.mubr.msk.f32.mxu0 %vm3801_vm0, %v3800_v0 }
  0xc9   :  { %v125_v9 = vpop.f32.mrf.mxu0 }
  0xca   :  { %v3909_v10 = vadd.f32 %v2989_v8, %v125_v9 }
  0xcb   :  { %v3282_v11 = vpop.f32.mrf.mxu0 }
  0xcc   :  { %142 = vrot.lane.b32.xlu1 %v3909_v10, %s3802_s25 }
  0xcd   :  { %v130_v12 = vpop.f32.mrf.mxu0 }
  0xce   :  { %v3919_v17 = vadd.f32 %v2989_v8, %v130_v12 }
  0xcf   :  { %v3285_v13 = vpop.f32.mrf.mxu0 }
  0xd1   :  { %v135_v14 = vpop.f32.mrf.mxu0 }
  0xd2   :  { %v3913_v15 = vadd.f32 %v2989_v8, %v135_v14 }
  0xd3   :  { %v3288_v16 = vpop.f32.mrf.mxu0 }
  0xd4   :  { %389 = vrot.lane.b32.xlu1 %v3913_v15, %s3803_s26  ;;  %146 = vrot.lane.b32.xlu0 %v3913_v15, %s3802_s25 }
  0xd8   :  { %385 = vrot.lane.b32.xlu1 %v3909_v10, %s3803_s26  ;;  %144 = vrot.lane.b32.xlu0 %v3919_v17, %s3802_s25 }
  0xdc   :  { %630 = vrot.lane.b32.xlu1 %v3913_v15, %s3804_s27  ;;  %387 = vrot.lane.b32.xlu0 %v3919_v17, %s3803_s26 }
  0xe0   :  { %628 = vrot.lane.b32.xlu1 %v3919_v17, %s3804_s27  ;;  %379 = vrot.lane.b32.xlu0 %v3909_v10, %s3805_s28 }
  0xe4   :  { %626 = vrot.lane.b32.xlu1 %v3909_v10, %s3804_s27  ;;  %381 = vrot.lane.b32.xlu0 %v3919_v17, %s3805_s28 }
  0xe8   :  { %622 = vrot.lane.b32.xlu1 %v3919_v17, %s3806_s29  ;;  %383 = vrot.lane.b32.xlu0 %v3913_v15, %s3805_s28 }
  0xec   :  { %281 = vrot.lane.b32.xlu1 %v3909_v10, %s3807_s30  ;;  %620 = vrot.lane.b32.xlu0 %v3909_v10, %s3806_s29 }
  0xf0   :  { %522 = vrot.lane.b32.xlu1 %v3909_v10, %s3808_s10  ;;  %624 = vrot.lane.b32.xlu0 %v3913_v15, %s3806_s29 }
  0xf4   :  { %285 = vrot.lane.b32.xlu1 %v3913_v15, %s3807_s30  ;;  %283 = vrot.lane.b32.xlu0 %v3919_v17, %s3807_s30 }
  0xf8   :  { %526 = vrot.lane.b32.xlu1 %v3913_v15, %s3808_s10  ;;  %524 = vrot.lane.b32.xlu0 %v3919_v17, %s3808_s10 }
  0xfc   :  { %767 = vrot.lane.b32.xlu1 %v3913_v15, %s3809_s11 }
 0x13e   :  { %v143_v18 = vpop.permute.xlu1 %142 }
 0x146   :  { %v390_v19 = vpop.permute.xlu1 %389  ;;  %v147_v20 = vpop.permute.xlu0 %146 }
 0x147   :  { %3290 = vmatpush3.xpose.msk.msra.mxu1 %vm148_vm2, %v147_v20 }
 0x148   :  { %3291 = vmatprep.subr.mxu1 %v3800_v0 }
 0x14a   :  { %v386_v21 = vpop.permute.xlu1 %385  ;;  %v145_v22 = vpop.permute.xlu0 %144 }
 0x14b   :  { %3292 = vmatpush3.xpose.msk.msra.mxu1 %vm148_vm2, %v145_v22 }
 0x14c   :  { %3293 = vmatprep.subr.mxu1 %v3800_v0 }
 0x14e   :  { %v631_v23 = vpop.permute.xlu1 %630  ;;  %v388_v24 = vpop.permute.xlu0 %387 }
 0x14f   :  { %3294 = vmatpush3.xpose.msk.msra.mxu1 %vm148_vm2, %v143_v18 }
 0x150   :  { %3319 = vmatprep.subr.mxu1 %v3800_v0 }
 0x152   :  { %v629_v25 = vpop.permute.xlu1 %628  ;;  %3296 = vmatmul.mubr.msk.f32.vlgmr.msra.gmra.mxu1 %vm148_vm2, %v3909_v10  ;;  %v380_v26 = vpop.permute.xlu0 %379 }
 0x153   :  { %3320 = vmatpush3.xpose.msk.msra.mxu1 %vm148_vm2, %v390_v19  ;;  %3298 = vmatprep.mubr.msk.f32.mxu1 %vm3801_vm0, %v3800_v0 }
 0x154   :  { %3321 = vmatprep.subr.mxu1 %v3800_v0 }
 0x156   :  { %v627_v27 = vpop.permute.xlu1 %626  ;;  %3299 = vmatmul.mubr.msk.f32.gmra.mxu1 %vm148_vm2, %v3919_v17  ;;  %v382_v28 = vpop.permute.xlu0 %381 }
 0x157   :  { %3322 = vmatpush3.xpose.msk.msra.mxu1 %vm148_vm2, %v388_v24  ;;  %3301 = vmatprep.mubr.msk.f32.mxu1 %vm3801_vm0, %v3800_v0 }
 0x158   :  { %3323 = vmatprep.subr.mxu1 %v3800_v0 }
 0x15a   :  { %v623_v29 = vpop.permute.xlu1 %622  ;;  %3302 = vmatmul.mubr.msk.f32.gmra.mxu1 %vm148_vm2, %v3913_v15  ;;  %v384_v30 = vpop.permute.xlu0 %383 }
 0x15b   :  { %3324 = vmatpush3.xpose.msk.msra.mxu1 %vm148_vm2, %v386_v21  ;;  %3325 = vmatprep.mubr.msk.f32.mxu1 %vm3801_vm0, %v3800_v0 }
 0x15c   :  { %3349 = vmatprep.subr.mxu1 %v3800_v0 }
 0x15e   :  { %v282_v31 = vpop.permute.xlu1 %281  ;;  %3326 = vmatmul.mubr.msk.f32.vlgmr.msra.gmra.mxu1 %vm148_vm2, %v380_v26  ;;  %v621_v32 = vpop.permute.xlu0 %620 }
 0x15f   :  { %3350 = vmatpush3.xpose.msk.msra.mxu1 %vm148_vm2, %v631_v23  ;;  %3328 = vmatprep.mubr.msk.f32.mxu1 %vm3801_vm0, %v3800_v0 }
 0x160   :  { %3351 = vmatprep.subr.mxu1 %v3800_v0 }
 0x162   :  { %v3988_v33 = vpop.permute.xlu1 %522  ;;  %3329 = vmatmul.mubr.msk.f32.gmra.mxu1 %vm148_vm2, %v382_v28  ;;  %v625_v34 = vpop.permute.xlu0 %624 }
 0x163   :  { %3352 = vmatpush3.xpose.msk.msra.mxu1 %vm148_vm2, %v629_v25  ;;  %3331 = vmatprep.mubr.msk.f32.mxu1 %vm3801_vm0, %v3800_v0 }
 0x164   :  { %3353 = vmatprep.subr.mxu1 %v3800_v0 }
 0x166   :  { %v286_v35 = vpop.permute.xlu1 %285  ;;  %3332 = vmatmul.mubr.msk.f32.gmra.mxu1 %vm148_vm2, %v384_v30  ;;  %v284_v36 = vpop.permute.xlu0 %283 }
 0x167   :  { %3305 = vmatpush3.msra.mxu0 %v286_v35  ;;  %3354 = vmatpush3.xpose.msk.msra.mxu1 %vm148_vm2, %v627_v27 }
 0x168   :  { %3306 = vmatprep.subr.mxu0 %v3800_v0  ;;  %3355 = vmatprep.mubr.msk.f32.mxu1 %vm3801_vm0, %v3800_v0 }
 0x169   :  { %3307 = vmatpush3.msra.mxu0 %v284_v36  ;;  %3664 = vmatprep.subr.mxu1 %v3800_v0 }
 0x16a   :  { %3308 = vmatprep.subr.mxu0 %v3800_v0  ;;  %3356 = vmatmul.mubr.msk.f32.vlgmr.msra.gmra.mxu1 %vm148_vm2, %v621_v32  ;;  %v4055_v25 = vpop.permute.xlu1 %526  ;;  %v4059_v27 = vpop.permute.xlu0 %524 }
 0x16b   :  { %3309 = vmatpush3.msra.mxu0 %v282_v31  ;;  %3358 = vmatprep.mubr.msk.f32.mxu1 %vm3801_vm0, %v3800_v0 }
 0x16c   :  { %3334 = vmatprep.subr.mxu0 %v3800_v0 }
 0x16e   :  { %3359 = vmatmul.mubr.msk.f32.gmra.mxu1 %vm148_vm2, %v623_v29  ;;  %v4057_v26 = vpop.permute.xlu1 %767 }
 0x16f   :  { %3361 = vmatprep.mubr.msk.f32.mxu1 %vm3801_vm0, %v3800_v0 }
 0x172   :  { %3362 = vmatmul.mubr.msk.f32.gmra.mxu1 %vm148_vm2, %v625_v34 }
 0x173   :  { %3388 = vmatprep.mubr.msk.f32.mxu1 %vm3801_vm0, %v3800_v0 }
 0x212   :  { %v227_v37 = vpop.f32.mrf.mxu1 }
 0x213   :  { %v241_v39 = vmul.f32 0.35355338, %v227_v37 }
 0x214   :  { %v3297_v40 = vpop.f32.mrf.mxu1 }
 0x215   :  { %v244_v41 = vadd.f32 %v241_v39, %v4015_v38 }
 0x216   :  { %v232_v42 = vpop.f32.mrf.mxu1 }
 0x217   :  { %v242_v44 = vmul.f32 0.35355338, %v232_v42  ;;  %v248_v45 = vsel %vm247_vm3, %v244_v41, -inf }
 0x218   :  { %249 = vmax.xlane.f32.xlu1 %v248_v45  ;;  %v3300_v46 = vpop.f32.mrf.mxu1 }
 0x219   :  { %v245_v47 = vadd.f32 %v242_v44, %v4021_v43 }
 0x21a   :  { %v237_v48 = vpop.f32.mrf.mxu1 }
 0x21b   :  { %v243_v50 = vmul.f32 0.35355338, %v237_v48  ;;  %v251_v51 = vsel %vm247_vm3, %v245_v47, -inf }
 0x21c   :  { %252 = vmax.xlane.f32.xlu0 %v251_v51  ;;  %v3303_v52 = vpop.f32.mrf.mxu1 }
 0x21d   :  { %v246_v53 = vadd.f32 %v243_v50, %v4028_v49 }
 0x21e   :  { %v469_v54 = vpop.f32.mrf.mxu1 }
 0x21f   :  { %v483_v55 = vmul.f32 0.35355338, %v469_v54  ;;  %v254_v56 = vsel %vm247_vm3, %v246_v53, -inf }
 0x220   :  { %255 = vmax.xlane.f32.xlu0 %v254_v56  ;;  %v3327_v57 = vpop.f32.mrf.mxu1 }
 0x221   :  { %v486_v58 = vadd.f32 %v483_v55, %v4015_v38 }
 0x222   :  { %v474_v59 = vpop.f32.mrf.mxu1 }
 0x223   :  { %v484_v60 = vmul.f32 0.35355338, %v474_v59  ;;  %v489_v61 = vsel %vm247_vm3, %v486_v58, -inf }
 0x224   :  { %490 = vmax.xlane.f32.xlu1 %v489_v61  ;;  %v3330_v62 = vpop.f32.mrf.mxu1 }
 0x225   :  { %v487_v63 = vadd.f32 %v484_v60, %v4021_v43 }
 0x226   :  { %v479_v1 = vpop.f32.mrf.mxu1 }
 0x227   :  { %v485_v2 = vmul.f32 0.35355338, %v479_v1  ;;  %v492_v3 = vsel %vm247_vm3, %v487_v63, -inf }
 0x228   :  { %493 = vmax.xlane.f32.xlu0 %v492_v3  ;;  %v3333_v4 = vpop.f32.mrf.mxu1 }
 0x229   :  { %v488_v5 = vadd.f32 %v485_v2, %v4028_v49 }
 0x22a   :  { %v710_v6 = vpop.f32.mrf.mxu1 }
 0x22b   :  { %v724_v7 = vmul.f32 0.35355338, %v710_v6  ;;  %v495_v8 = vsel %vm247_vm3, %v488_v5, -inf }
 0x22c   :  { %496 = vmax.xlane.f32.xlu1 %v495_v8  ;;  %v3357_v9 = vpop.f32.mrf.mxu1 }
 0x22d   :  { %v727_v11 = vadd.f32 %v724_v7, %v4015_v38 }
 0x22e   :  { %v715_v12 = vpop.f32.mrf.mxu1 }
 0x22f   :  { %v725_v13 = vmul.f32 0.35355338, %v715_v12  ;;  %v730_v14 = vsel %vm247_vm3, %v727_v11, -inf }
 0x230   :  { %731 = vmax.xlane.f32.xlu0 %v730_v14  ;;  %v3360_v16 = vpop.f32.mrf.mxu1 }
 0x231   :  { %v4042_v18 = vadd.f32 %v725_v13, %v4021_v43 }
 0x232   :  { %v720_v19 = vpop.f32.mrf.mxu1 }
 0x233   :  { %v726_v20 = vmul.f32 0.35355338, %v720_v19  ;;  %v733_v21 = vsel %vm247_vm3, %v4042_v18, -inf }
 0x234   :  { %734 = vmax.xlane.f32.xlu1 %v733_v21  ;;  %v3363_v22 = vpop.f32.mrf.mxu1 }
 0x235   :  { %v4047_v23 = vadd.f32 %v726_v20, %v4028_v49 }
 0x237   :  { %v736_v24 = vsel %vm247_vm3, %v4047_v23, -inf }
 0x238   :  { %737 = vmax.xlane.f32.xlu0 %v736_v24 }
 0x245   :  { %763 = vrot.lane.b32.xlu1 %v3909_v10, %s3809_s11 }
 0x24e   :  { %765 = vrot.lane.b32.xlu0 %v3919_v17, %s3809_s11 }
 0x2a1   :  { %v250_v28 = vpop.xlane.xlu1 %249 }
 0x2a2   :  { %v257_v29 = vsub.f32 %v244_v41, %v250_v28 }
 0x2a4   :  { %v260_v30 = vmul.f32 1.442695, %v257_v29 }
 0x2a5   :  { %v253_v31 = vpop.xlane.xlu0 %252 }
 0x2a6   :  { %3686 = vpow2.f32 %v260_v30  ;;  %v258_v32 = vsub.f32 %v245_v47, %v253_v31 }
 0x2a8   :  { %v262_v34 = vmul.f32 1.442695, %v258_v32 }
 0x2a9   :  { %v256_v35 = vpop.xlane.xlu0 %255 }
 0x2aa   :  { %3688 = vpow2.f32 %v262_v34  ;;  %v259_v36 = vsub.f32 %v246_v53, %v256_v35 }
 0x2ac   :  { %v264_v37 = vmul.f32 1.442695, %v259_v36 }
 0x2ad   :  { %v491_v39 = vpop.xlane.xlu1 %490 }
 0x2ae   :  { %3690 = vpow2.f32 %v264_v37  ;;  %v498_v40 = vsub.f32 %v486_v58, %v491_v39 }
 0x2b0   :  { %v501_v42 = vmul.f32 1.442695, %v498_v40 }
 0x2b1   :  { %v494_v44 = vpop.xlane.xlu0 %493 }
 0x2b2   :  { %3692 = vpow2.f32 %v501_v42  ;;  %v499_v45 = vsub.f32 %v487_v63, %v494_v44 }
 0x2b3   :  { %v4061_v46 = vpop.eup %3686 }
 0x2b4   :  { %v503_v48 = vmul.f32 1.442695, %v499_v45  ;;  %v266_v41 = vsel %vm247_vm3, %v4061_v46, 0.0 }
 0x2b5   :  { %v497_v50 = vpop.xlane.xlu1 %496  ;;  %267 = vadd.xlane.f32.xlu1 %v266_v41 }
 0x2b6   :  { %3694 = vpow2.f32 %v503_v48  ;;  %v500_v47 = vsub.f32 %v488_v5, %v497_v50 }
 0x2b7   :  { %v4065_v51 = vpop.eup %3688 }
 0x2b8   :  { %v505_v52 = vmul.f32 1.442695, %v500_v47  ;;  %v269_v53 = vsel %vm247_vm3, %v4065_v51, 0.0 }
 0x2b9   :  { %270 = vadd.xlane.f32.xlu0 %v269_v53  ;;  %v732_v54 = vpop.xlane.xlu0 %731 }
 0x2ba   :  { %3696 = vpow2.f32 %v505_v52  ;;  %v739_v55 = vsub.f32 %v727_v11, %v732_v54 }
 0x2bb   :  { %v4069_v56 = vpop.eup %3690 }
 0x2bc   :  { %v742_v57 = vmul.f32 1.442695, %v739_v55  ;;  %v272_v58 = vsel %vm247_vm3, %v4069_v56, 0.0 }
 0x2bd   :  { %273 = vadd.xlane.f32.xlu1 %v272_v58  ;;  %v735_v4 = vpop.xlane.xlu1 %734 }
 0x2be   :  { %3698 = vpow2.f32 %v742_v57  ;;  %v740_v5 = vsub.f32 %v4042_v18, %v735_v4 }
 0x2bf   :  { %v4073_v59 = vpop.eup %3692 }
 0x2c0   :  { %v507_v60 = vsel %vm247_vm3, %v4073_v59, 0.0  ;;  %v744_v6 = vmul.f32 1.442695, %v740_v5 }
 0x2c1   :  { %508 = vadd.xlane.f32.xlu0 %v507_v60  ;;  %v738_v7 = vpop.xlane.xlu0 %737  ;;  %v764_v16 = vpop.permute.xlu1 %763 }
 0x2c2   :  { %3700 = vpow2.f32 %v744_v6  ;;  %v741_v8 = vsub.f32 %v4047_v23, %v738_v7 }
 0x2c3   :  { %v4077_v61 = vpop.eup %3694 }
 0x2c4   :  { %v510_v62 = vsel %vm247_vm3, %v4077_v61, 0.0  ;;  %v746_v9 = vmul.f32 1.442695, %v741_v8 }
 0x2c5   :  { %511 = vadd.xlane.f32.xlu1 %v510_v62  ;;  %v766_v18 = vpop.permute.xlu0 %765 }
 0x2c6   :  { %3702 = vpow2.f32 %v746_v9 }
 0x2c7   :  { %v4081_v63 = vpop.eup %3696 }
 0x2c8   :  { %v513_v1 = vsel %vm247_vm3, %v4081_v63, 0.0 }
 0x2c9   :  { %514 = vadd.xlane.f32.xlu0 %v513_v1 }
 0x2cb   :  { %v4085_v2 = vpop.eup %3698 }
 0x2cc   :  { %v748_v3 = vsel %vm247_vm3, %v4085_v2, 0.0 }
 0x2cd   :  { %749 = vadd.xlane.f32.xlu0 %v748_v3 }
 0x2cf   :  { %v4095_v11 = vpop.eup %3700 }
 0x2d0   :  { %v751_v12 = vsel %vm247_vm3, %v4095_v11, 0.0 }
 0x2d3   :  { %v4099_v13 = vpop.eup %3702 }
 0x2d4   :  { %v754_v14 = vsel %vm247_vm3, %v4099_v13, 0.0 }
 0x2d6   :  { %869 = vrot.lane.b32.xlu1 %v3919_v17, %s3810_s18 }
 0x2e3   :  { %871 = vrot.lane.b32.xlu0 %v3913_v15, %s3810_s18 }
 0x2fa   :  { %752 = vadd.xlane.f32.xlu1 %v751_v12 }
 0x302   :  { %755 = vadd.xlane.f32.xlu0 %v754_v14 }
 0x30b   :  { %861 = vrot.lane.b32.xlu1 %v3909_v10, %s3811_s19 }
 0x30f   :  { %865 = vrot.lane.b32.xlu1 %v3913_v15, %s3811_s19 }
 0x318   :  { %867 = vrot.lane.b32.xlu0 %v3909_v10, %s3810_s18 }
 0x31c   :  { %863 = vrot.lane.b32.xlu0 %v3919_v17, %s3811_s19 }
 0x33e   :  { %v268_v19 = vpop.xlane.xlu1 %267 }
 0x33f   :  { %3704 = vrcp.f32 %v268_v19 }
 0x342   :  { %v271_v20 = vpop.xlane.xlu0 %270 }
 0x343   :  { %3706 = vrcp.f32 %v271_v20 }
 0x346   :  { %v274_v21 = vpop.xlane.xlu1 %273 }
 0x347   :  { %3708 = vrcp.f32 %v274_v21 }
 0x34a   :  { %v509_v22 = vpop.xlane.xlu0 %508 }
 0x34b   :  { %3710 = vrcp.f32 %v509_v22 }
 0x34c   :  { %v3705_v23 = vpop.eup %3704 }
 0x34d   :  { %v278_v24 = vmul.f32 %v3705_v23, %v4061_v46 }
 0x34e   :  { %v512_v28 = vpop.xlane.xlu1 %511 }
 0x34f   :  { %3712 = vrcp.f32 %v512_v28  ;;  %3311 = vmatmul.mubr.msk.f32.vlgmr.msra.gmra.mxu0 %vm247_vm3, %v278_v24 }
 0x350   :  { %v3707_v29 = vpop.eup %3706  ;;  %3335 = vmatpush3.msra.mxu0 %v4055_v25  ;;  %3313 = vmatprep.mubr.msk.f32.mxu0 %vm3801_vm0, %v3800_v0 }
 0x351   :  { %3336 = vmatprep.subr.mxu0 %v3800_v0  ;;  %v279_v30 = vmul.f32 %v3707_v29, %v4065_v51 }
 0x352   :  { %3337 = vmatpush3.msra.mxu0 %v4059_v27  ;;  %v515_v31 = vpop.xlane.xlu0 %514  ;;  %v870_v39 = vpop.permute.xlu1 %869 }
 0x353   :  { %3338 = vmatprep.subr.mxu0 %v3800_v0  ;;  %3714 = vrcp.f32 %v515_v31  ;;  %3314 = vmatmul.mubr.msk.f32.gmra.mxu0 %vm247_vm3, %v279_v30 }
 0x354   :  { %v3709_v32 = vpop.eup %3708  ;;  %3339 = vmatpush3.msra.mxu0 %v3988_v33  ;;  %3316 = vmatprep.mubr.msk.f32.mxu0 %vm3801_vm0, %v3800_v0 }
 0x355   :  { %v280_v25 = vmul.f32 %v3709_v32, %v4069_v56  ;;  %3364 = vmatprep.subr.mxu0 %v3800_v0 }
 0x356   :  { %v750_v34 = vpop.xlane.xlu0 %749 }
 0x357   :  { %3716 = vrcp.f32 %v750_v34  ;;  %3317 = vmatmul.mubr.msk.f32.gmra.mxu0 %vm247_vm3, %v280_v25 }
 0x358   :  { %v3711_v27 = vpop.eup %3710  ;;  %3340 = vmatprep.mubr.msk.f32.mxu0 %vm3801_vm0, %v3800_v0 }
 0x359   :  { %v519_v35 = vmul.f32 %v3711_v27, %v4073_v59 }
 0x35a   :  { %v872_v36 = vpop.permute.xlu0 %871 }
 0x35b   :  { %3341 = vmatmul.mubr.msk.f32.vlgmr.msra.gmra.mxu0 %vm247_vm3, %v519_v35  ;;  %3667 = vmatpush3.xpose.msk.msra.mxu1 %vm148_vm2, %v872_v36 }
 0x35c   :  { %v3713_v33 = vpop.eup %3712  ;;  %3365 = vmatpush3.msra.mxu0 %v4057_v26  ;;  %3343 = vmatprep.mubr.msk.f32.mxu0 %vm3801_vm0, %v3800_v0 }
 0x35d   :  { %3366 = vmatprep.subr.mxu0 %v3800_v0  ;;  %3665 = vmatprep.subr.mxu1 %v3800_v0  ;;  %v520_v37 = vmul.f32 %v3713_v33, %v4077_v61 }
 0x35e   :  { %3367 = vmatpush3.msra.mxu0 %v766_v18 }
 0x35f   :  { %3368 = vmatprep.subr.mxu0 %v3800_v0  ;;  %3344 = vmatmul.mubr.msk.f32.gmra.mxu0 %vm247_vm3, %v520_v37 }
 0x360   :  { %v3715_v40 = vpop.eup %3714  ;;  %3369 = vmatpush3.msra.mxu0 %v764_v16  ;;  %3668 = vmatpush3.xpose.msk.msra.mxu1 %vm148_vm2, %v870_v39 }
 0x361   :  { %3346 = vmatprep.mubr.msk.f32.mxu0 %vm3801_vm0, %v3800_v0  ;;  %v521_v26 = vmul.f32 %v3715_v40, %v4081_v63  ;;  %3379 = vmatprep.subr.mxu0 %v3800_v0 }
 0x362   :  { %3666 = vmatprep.subr.mxu1 %v3800_v0 }
 0x363   :  { %3347 = vmatmul.mubr.msk.f32.gmra.mxu0 %vm247_vm3, %v521_v26 }
 0x364   :  { %v3717_v42 = vpop.eup %3716  ;;  %3370 = vmatprep.mubr.msk.f32.mxu0 %vm3801_vm0, %v3800_v0 }
 0x365   :  { %v760_v44 = vmul.f32 %v3717_v42, %v4085_v2 }
 0x367   :  { %3371 = vmatmul.mubr.msk.f32.vlgmr.msra.gmra.mxu0 %vm247_vm3, %v760_v44 }
 0x368   :  { %3380 = vmatpush3.xpose.msk.msra.mxu0 %vm148_vm2, %v872_v36  ;;  %3373 = vmatprep.mubr.msk.f32.mxu0 %vm3801_vm0, %v3800_v0 }
 0x369   :  { %3381 = vmatprep.subr.mxu0 %v3800_v0 }
 0x36c   :  { %3382 = vmatpush3.xpose.msk.msra.mxu0 %vm148_vm2, %v870_v39 }
 0x36d   :  { %3383 = vmatprep.subr.mxu0 %v3800_v0 }
 0x383   :  { %v753_v45 = vpop.xlane.xlu1 %752 }
 0x384   :  { %3718 = vrcp.f32 %v753_v45 }
 0x387   :  { %v862_v50 = vpop.permute.xlu1 %861 }
 0x38b   :  { %v756_v46 = vpop.xlane.xlu0 %755  ;;  %v866_v52 = vpop.permute.xlu1 %865 }
 0x38c   :  { %3720 = vrcp.f32 %v756_v46 }
 0x38f   :  { %v868_v48 = vpop.permute.xlu0 %867 }
 0x390   :  { %3384 = vmatpush3.xpose.msk.msra.mxu0 %vm148_vm2, %v868_v48  ;;  %3669 = vmatpush3.xpose.msk.msra.mxu1 %vm148_vm2, %v868_v48 }
 0x391   :  { %v3719_v41 = vpop.eup %3718  ;;  %3394 = vmatprep.subr.mxu0 %v3800_v0  ;;  %3409 = vmatprep.subr.mxu1 %v3800_v0 }
 0x392   :  { %v761_v47 = vmul.f32 %v3719_v41, %v4095_v11 }
 0x393   :  { %v864_v51 = vpop.permute.xlu0 %863 }
 0x394   :  { %3374 = vmatmul.mubr.msk.f32.gmra.mxu0 %vm247_vm3, %v761_v47  ;;  %3389 = vmatmul.mubr.msk.f32.vlgmr.msra.gmra.mxu1 %vm148_vm2, %v864_v51 }
 0x395   :  { %3391 = vmatprep.mubr.msk.f32.mxu1 %vm3801_vm0, %v3800_v0  ;;  %3376 = vmatprep.mubr.msk.f32.mxu0 %vm3801_vm0, %v3800_v0 }
 0x398   :  { %3392 = vmatmul.mubr.msk.f32.gmra.mxu1 %vm148_vm2, %v866_v52  ;;  %v1152_v52 = vld [vmem:[%s4902_s4 + $0x18] sm:$0xff] }
 0x399   :  { %v3721_v53 = vpop.eup %3720  ;;  %3417 = vmatprep.mubr.msk.f32.mxu1 %vm3801_vm0, %v3800_v0  ;;  %3410 = vmatpush3.msra.mxu1 %v1152_v52  ;;  %v1396_v52 = vld [vmem:[%s4905_s7 + $0x30] sm:$0xff] }
 0x39a   :  { %v762_v54 = vmul.f32 %v3721_v53, %v4099_v13  ;;  %v1151_v53 = vld [vmem:[%s4902_s4 + $0x10] sm:$0xff]  ;;  %3411 = vmatprep.subr.mxu1 %v3800_v0 }
 0x39b   :  { %3412 = vmatpush3.msra.mxu1 %v1151_v53  ;;  %v1395_v53 = vld [vmem:[%s4905_s7 + $0x28] sm:$0xff] }
 0x39c   :  { %3377 = vmatmul.mubr.msk.f32.gmra.mxu0 %vm247_vm3, %v762_v54  ;;  %v1150_v54 = vld [vmem:[%s4902_s4 + $0x8] sm:$0xff]  ;;  %3413 = vmatprep.subr.mxu1 %v3800_v0 }
 0x39d   :  { %3385 = vmatprep.mubr.msk.f32.mxu0 %vm3801_vm0, %v3800_v0  ;;  %3414 = vmatpush3.msra.mxu1 %v1150_v54  ;;  %v1394_v54 = vld [vmem:[%s4905_s7 + $0x20] sm:$0xff] }
 0x39e   :  { %3415 = vmatprep.subr.mxu1 %v3800_v0 }
 0x3a0   :  { %3386 = vmatmul.mubr.msk.f32.vlgmr.msra.gmra.mxu0 %vm148_vm2, %v862_v50 }
 0x3a1   :  { %3400 = vmatprep.mubr.msk.f32.mxu0 %vm3801_vm0, %v3800_v0 }
 0x40f   :  { %v4178_v55 = vpop.f32.mrf.mxu0 }
 0x411   :  { %v3312_v56 = vpop.f32.mrf.mxu0 }
 0x412   :  { %v1149_v56 = vld [vmem:[%s4902_s4] sm:$0xff] }
 0x413   :  { %v4180_v57 = vpop.f32.mrf.mxu0  ;;  %3416 = vmatpush3.msra.mxu1 %v1149_v56  ;;  %v1393_v56 = vld [vmem:[%s4905_s7 + $0x18] sm:$0xff] }
 0x414   :  { %3443 = vmatprep.subr.mxu1 %v3800_v0 }
 0x415   :  { %v3315_v58 = vpop.f32.mrf.mxu0 }
 0x416   :  { %v1266_v58 = vld [vmem:[%s4903_s5 + $0x18] sm:$0xff] }
 0x417   :  { %v4182_v59 = vpop.f32.mrf.mxu0 }
 0x419   :  { %v3318_v60 = vpop.f32.mrf.mxu0 }
 0x41b   :  { %v606_v61 = vpop.f32.mrf.mxu0 }
 0x41d   :  { %v3342_v62 = vpop.f32.mrf.mxu0 }
 0x41f   :  { %v611_v63 = vpop.f32.mrf.mxu0 }
 0x421   :  { %v3345_v1 = vpop.f32.mrf.mxu0 }
 0x423   :  { %v4184_v2 = vpop.f32.mrf.mxu0 }
 0x425   :  { %v3348_v3 = vpop.f32.mrf.mxu0 }
 0x427   :  { %v847_v4 = vpop.f32.mrf.mxu0 }
 0x429   :  { %v3372_v5 = vpop.f32.mrf.mxu0 }
 0x454   :  { %v852_v6 = vpop.f32.mrf.mxu0  ;;  %v956_v7 = vpop.f32.mrf.mxu1 }
 0x455   :  { %v966_v8 = vmul.f32 0.35355338, %v956_v7 }
 0x456   :  { %v3375_v9 = vpop.f32.mrf.mxu0  ;;  %v3390_v11 = vpop.f32.mrf.mxu1 }
 0x457   :  { %v969_v12 = vadd.f32 %v966_v8, %v4021_v43 }
 0x458   :  { %v961_v13 = vpop.f32.mrf.mxu1 }
 0x459   :  { %v974_v14 = vsel %vm247_vm3, %v969_v12, -inf  ;;  %v967_v21 = vmul.f32 0.35355338, %v961_v13 }
 0x45a   :  { %975 = vmax.xlane.f32.xlu1 %v974_v14  ;;  %v3393_v16 = vpop.f32.mrf.mxu1 }
 0x45b   :  { %v970_v29 = vadd.f32 %v967_v21, %v4028_v49 }
 0x45c   :  { %v4188_v18 = vpop.f32.mrf.mxu0 }
 0x45d   :  { %v977_v43 = vsel %vm247_vm3, %v970_v29, -inf }
 0x45e   :  { %v3378_v19 = vpop.f32.mrf.mxu0 }
 0x460   :  { %v951_v20 = vpop.f32.mrf.mxu0 }
 0x461   :  { %v965_v22 = vmul.f32 0.35355338, %v951_v20 }
 0x462   :  { %v3387_v23 = vpop.f32.mrf.mxu0 }
 0x463   :  { %v968_v24 = vadd.f32 %v965_v22, %v4015_v38  ;;  %v1265_v22 = vld [vmem:[%s4903_s5 + $0x10] sm:$0xff]  ;;  %v1263_v23 = vld [vmem:[%s4903_s5] sm:$0xff] }
 0x465   :  { %v971_v28 = vsel %vm247_vm3, %v968_v24, -inf }
 0x466   :  { %972 = vmax.xlane.f32.xlu0 %v971_v28 }
 0x46a   :  { %978 = vmax.xlane.f32.xlu0 %v977_v43  ;;  %v4285_v43 = vld [vmem:[%s4904_s8] sm:$0x3f] }
 0x4e3   :  { %v976_v30 = vpop.xlane.xlu1 %975 }
 0x4e4   :  { %v981_v31 = vsub.f32 %v969_v12, %v976_v30 }
 0x4e6   :  { %v985_v32 = vmul.f32 1.442695, %v981_v31 }
 0x4e8   :  { %3722 = vpow2.f32 %v985_v32 }
 0x4ef   :  { %v973_v25 = vpop.xlane.xlu0 %972 }
 0x4f0   :  { %v980_v34 = vsub.f32 %v968_v24, %v973_v25  ;;  %v1153_v24 = vlaneseq }
 0x4f2   :  { %v983_v33 = vmul.f32 1.442695, %v980_v34  ;;  %v4279_v28 = vshrl.u32 %v1153_v24, 7 }
 0x4f3   :  { %v979_v27 = vpop.xlane.xlu0 %978 }
 0x4f4   :  { %v982_v35 = vsub.f32 %v970_v29, %v979_v27  ;;  %v1155_v29 = vsub.s32 0, %v4279_v28  ;;  %v1251_v31 = vsub.s32 1, %v4279_v28  ;;  %v1258_v32 = vsub.s32 2, %v4279_v28 }
 0x4f5   :  { %v3723_v36 = vpop.eup %3722 }
 0x4f6   :  { %v987_v37 = vmul.f32 1.442695, %v982_v35  ;;  %v992_v38 = vsel %vm247_vm3, %v3723_v36, 0.0  ;;  %v1156_v30 = vrot.slane %v4285_v43, %v1155_v29  ;;  %v1252_v27 = vrot.slane %v4285_v43, %v1251_v31 }
 0x4f7   :  { %993 = vadd.xlane.f32.xlu1 %v992_v38 }
 0x4f8   :  { %3724 = vpow2.f32 %v987_v37  ;;  %v1259_v37 = vrot.slane %v4285_v43, %v1258_v32 }
 0x4f9   :  { %3726 = vpow2.f32 %v983_v33 }
 0x505   :  { %v3725_v49 = vpop.eup %3724 }
 0x506   :  { %v995_v39 = vsel %vm247_vm3, %v3725_v49, 0.0  ;;  %v3727_v40 = vpop.eup %3726 }
 0x507   :  { %996 = vadd.xlane.f32.xlu0 %v995_v39  ;;  %v989_v26 = vsel %vm247_vm3, %v3727_v40, 0.0 }
 0x508   :  { %1008 = vrot.lane.b32.xlu1 %v3913_v15, %s3812_s20 }
 0x50b   :  { %990 = vadd.xlane.f32.xlu0 %v989_v26 }
 0x50c   :  { %1004 = vrot.lane.b32.xlu1 %v3909_v10, %s3812_s20 }
 0x510   :  { %1105 = vrot.lane.b32.xlu1 %v606_v61, %s3813_s21 }
 0x514   :  { %1119 = vrot.lane.b32.xlu1 %v852_v6, %s3814_s22 }
 0x521   :  { %1006 = vrot.lane.b32.xlu0 %v3919_v17, %s3812_s20 }
 0x525   :  { %1117 = vrot.lane.b32.xlu0 %v847_v4, %s3814_s22 }
 0x529   :  { %1107 = vrot.lane.b32.xlu0 %v611_v63, %s3813_s21 }
 0x580   :  { %v994_v15 = vpop.xlane.xlu1 %993 }
 0x584   :  { %v1009_v42 = vpop.permute.xlu1 %1008 }
 0x585   :  { %3395 = vmatpush3.msra.mxu0 %v1009_v42 }
 0x586   :  { %3396 = vmatprep.subr.mxu0 %v3800_v0 }
 0x588   :  { %v1005_v46 = vpop.permute.xlu1 %1004 }
 0x58c   :  { %v1106_v4 = vpop.permute.xlu1 %1105 }
 0x58d   :  { %v1138_v8 = vsel %vm148_vm2, %v4178_v55, %v1106_v4 }
 0x590   :  { %v997_v44 = vpop.xlane.xlu0 %996  ;;  %v1120_v6 = vpop.permute.xlu1 %1119 }
 0x594   :  { %v991_v10 = vpop.xlane.xlu0 %990 }
 0x595   :  { %3728 = vrcp.f32 %v991_v10 }
 0x596   :  { %3730 = vrcp.f32 %v994_v15  ;;  %v3795_v15 = vld [vmem:[%s4899_s0 + $0x8] sm:$0xff] }
 0x597   :  { %3732 = vrcp.f32 %v997_v44 }
 0x598   :  { %v1007_v45 = vpop.permute.xlu0 %1006 }
 0x599   :  { %3397 = vmatpush3.msra.mxu0 %v1007_v45 }
 0x59a   :  { %3398 = vmatprep.subr.mxu0 %v3800_v0 }
 0x59b   :  { %3399 = vmatpush3.msra.mxu0 %v1005_v46 }
 0x59c   :  { %3426 = vmatprep.subr.mxu0 %v3800_v0  ;;  %v1118_v5 = vpop.permute.xlu0 %1117 }
 0x5a0   :  { %v1108_v7 = vpop.permute.xlu0 %1107 }
 0x5a1   :  { %v1139_v11 = vsel %vm148_vm2, %v4180_v57, %v1108_v7 }
 0x5a2   :  { %v3729_v17 = vpop.eup %3728  ;;  %v1143_v14 = vsel %vm1141_vm4, %v1139_v11, %v1120_v6 }
 0x5a3   :  { %v1001_v48 = vmul.f32 %v3729_v17, %v3727_v40  ;;  %v3731_v41 = vpop.eup %3730 }
 0x5a4   :  { %v1002_v50 = vmul.f32 %v3731_v41, %v3723_v36  ;;  %v3733_v47 = vpop.eup %3732  ;;  %v3794_v36 = vld [vmem:[%s4899_s0] sm:$0xff] }
 0x5a5   :  { %3401 = vmatmul.mubr.msk.f32.vlgmr.msra.gmra.mxu0 %vm247_vm3, %v1001_v48  ;;  %v1003_v51 = vmul.f32 %v3733_v47, %v3725_v49  ;;  %v3796_v48 = vld [vmem:[%s4899_s0 + $0x10] sm:$0xff] }
 0x5a6   :  { %3403 = vmatprep.mubr.msk.f32.mxu0 %vm3801_vm0, %v3800_v0  ;;  %3427 = vmatpush3.msra.mxu0 %v1266_v58  ;;  %v1392_v58 = vld [vmem:[%s4905_s7 + $0x10] sm:$0xff] }
 0x5a7   :  { %3428 = vmatprep.subr.mxu0 %v3800_v0 }
 0x5a8   :  { %3429 = vmatpush3.msra.mxu0 %v1265_v22 }
 0x5a9   :  { %3404 = vmatmul.mubr.msk.f32.gmra.mxu0 %vm247_vm3, %v1002_v50  ;;  %3430 = vmatprep.subr.mxu0 %v3800_v0 }
 0x5aa   :  { %3406 = vmatprep.mubr.msk.f32.mxu0 %vm3801_vm0, %v3800_v0 }
 0x5ad   :  { %3407 = vmatmul.mubr.msk.f32.gmra.mxu0 %vm247_vm3, %v1003_v51  ;;  %v1397_v51 = vld [vmem:[%s4905_s7 + $0x38] sm:$0xff] }
 0x5ae   :  { %3434 = vmatprep.mubr.msk.f32.mxu0 %vm3801_vm0, %v3800_v0 }
 0x665   :  { %v1088_v60 = vpop.f32.mrf.mxu0 }
 0x666   :  { %1129 = vrot.lane.b32.xlu1 %v1088_v60, %s3815_s12  ;;  %v1391_v60 = vld [vmem:[%s4905_s7 + $0x8] sm:$0xff] }
 0x667   :  { %v3402_v61 = vpop.f32.mrf.mxu0 }
 0x668   :  { %v1390_v61 = vld [vmem:[%s4905_s7] sm:$0xff] }
 0x669   :  { %v1093_v62 = vpop.f32.mrf.mxu0 }
 0x66a   :  { %1109 = vrot.lane.b32.xlu1 %v4184_v2, %s3813_s21  ;;  %1131 = vrot.lane.b32.xlu0 %v1093_v62, %s3815_s12  ;;  %v1142_v2 = vsel %vm1141_vm4, %v1138_v8, %v1118_v5  ;;  %v3042_v62 = vld [vmem:[%s4898_s2 + $0x38] sm:$0xff] }
 0x66b   :  { %v3405_v63 = vpop.f32.mrf.mxu0 }
 0x66c   :  { %v3032_v63 = vld [vmem:[%s4906_s6] ss:$0 sm:$0xff] }
 0x66d   :  { %v1098_v1 = vpop.f32.mrf.mxu0 }
 0x66e   :  { %1121 = vrot.lane.b32.xlu0 %v4188_v18, %s3814_s22  ;;  %1133 = vrot.lane.b32.xlu1 %v1098_v1, %s3815_s12 }
 0x66f   :  { %v3408_v3 = vpop.f32.mrf.mxu0 }
 0x6d8   :  { %v1130_v9 = vpop.permute.xlu1 %1129 }
 0x6d9   :  { %v1145_v12 = vsel %vm247_vm3, %v1142_v2, %v1130_v9 }
 0x6da   :  { %3418 = vmatmul.mubr.msk.f32.vlgmr.msra.gmra.mxu1 %vm49_vm1, %v1145_v12 }
 0x6db   :  { %3420 = vmatprep.mubr.msk.f32.mxu1 %vm3801_vm0, %v3800_v0  ;;  %3444 = vmatpush3.msra.mxu1 %v1397_v51 }
 0x6dc   :  { %v1110_v13 = vpop.permute.xlu1 %1109  ;;  %v1132_v16 = vpop.permute.xlu0 %1131  ;;  %3445 = vmatprep.subr.mxu1 %v3800_v0 }
 0x6dd   :  { %v1146_v18 = vsel %vm247_vm3, %v1143_v14, %v1132_v16  ;;  %v1140_v55 = vsel %vm148_vm2, %v4182_v59, %v1110_v13  ;;  %v1264_v59 = vld [vmem:[%s4903_s5 + $0x8] sm:$0xff]  ;;  %3446 = vmatpush3.msra.mxu1 %v1396_v52 }
 0x6de   :  { %3421 = vmatmul.mubr.msk.f32.gmra.mxu1 %vm49_vm1, %v1146_v18  ;;  %3431 = vmatpush3.msra.mxu0 %v1264_v59 }
 0x6df   :  { %3423 = vmatprep.mubr.msk.f32.mxu1 %vm3801_vm0, %v3800_v0  ;;  %3432 = vmatprep.subr.mxu0 %v3800_v0 }
 0x6e0   :  { %v1122_v57 = vpop.permute.xlu0 %1121  ;;  %v1134_v19 = vpop.permute.xlu1 %1133  ;;  %3433 = vmatpush3.msra.mxu0 %v1263_v23  ;;  %3447 = vmatprep.subr.mxu1 %v3800_v0 }
 0x6e1   :  { %v1144_v20 = vsel %vm1141_vm4, %v1140_v55, %v1122_v57  ;;  %3468 = vmatprep.subr.mxu0 %v3800_v0  ;;  %3448 = vmatpush3.msra.mxu1 %v1395_v53 }
 0x6e2   :  { %v1147_v21 = vsel %vm247_vm3, %v1144_v20, %v1134_v19  ;;  %3449 = vmatprep.subr.mxu1 %v3800_v0 }
 0x6e3   :  { %3424 = vmatmul.mubr.msk.f32.gmra.mxu1 %vm49_vm1, %v1147_v21 }
 0x6e4   :  { %3459 = vmatprep.mubr.msk.f32.mxu1 %vm3801_vm0, %v3800_v0  ;;  %3450 = vmatpush3.msra.mxu1 %v1394_v54 }
 0x6e5   :  { %3451 = vmatprep.subr.mxu1 %v3800_v0 }
 0x6e6   :  { %3452 = vmatpush3.msra.mxu1 %v1393_v56 }
 0x6e7   :  { %3453 = vmatprep.subr.mxu1 %v3800_v0 }
 0x6e8   :  { %3454 = vmatpush3.msra.mxu1 %v1392_v58 }
 0x6e9   :  { %3455 = vmatprep.subr.mxu1 %v3800_v0 }
 0x6ea   :  { %3456 = vmatpush3.msra.mxu1 %v1391_v60 }
 0x6eb   :  { %3457 = vmatprep.subr.mxu1 %v3800_v0 }
 0x6ec   :  { %3458 = vmatpush3.msra.mxu1 %v1390_v61 }
 0x6ed   :  { %3485 = vmatprep.subr.mxu1 %v3800_v0 }
 0x79a   :  { %v1232_v25 = vpop.f32.mrf.mxu1 }
 0x79b   :  { %v1233_v34 = vadd.f32 %v1232_v25, %v1156_v30 }
 0x79c   :  { %v3419_v35 = vpop.f32.mrf.mxu1 }
 0x79d   :  { %v1246_v33 = vadd.f32 %v3794_v36, %v1233_v34 }
 0x79e   :  { %v1237_v38 = vpop.f32.mrf.mxu1 }
 0x79f   :  { %v1253_v49 = vmul.f32 %v1252_v27, %v1246_v33  ;;  %v1238_v39 = vadd.f32 %v1237_v38, %v1156_v30 }
 0x7a0   :  { %v3422_v40 = vpop.f32.mrf.mxu1 }
 0x7a1   :  { %v4301_v26 = vadd.f32 %v1259_v37, %v1253_v49  ;;  %v1247_v42 = vadd.f32 %v3795_v15, %v1238_v39  ;;  %v3041_v15 = vld [vmem:[%s4898_s2 + $0x30] sm:$0xff] }
 0x7a3   :  { %v1254_v44 = vmul.f32 %v1252_v27, %v1247_v42  ;;  %v1242_v10 = vpop.f32.mrf.mxu1  ;;  %3435 = vmatmul.mubr.msk.f32.vlgmr.msra.gmra.mxu0 %vm49_vm1, %v4301_v26  ;;  %v3040_v42 = vld [vmem:[%s4898_s2 + $0x28] sm:$0xff] }
 0x7a4   :  { %v1243_v45 = vadd.f32 %v1242_v10, %v1156_v30  ;;  %3437 = vmatprep.mubr.msk.f32.mxu0 %vm3801_vm0, %v3800_v0  ;;  %3469 = vmatpush3.msra.mxu0 %v3042_v62  ;;  %v1400_v10 = vsub.s32 3, %v4279_v28 }
 0x7a5   :  { %v4310_v46 = vadd.f32 %v1259_v37, %v1254_v44  ;;  %v3425_v17 = vpop.f32.mrf.mxu1  ;;  %3470 = vmatprep.subr.mxu0 %v3800_v0  ;;  %v3039_v44 = vld [vmem:[%s4898_s2 + $0x20] sm:$0xff] }
 0x7a6   :  { %v1248_v41 = vadd.f32 %v3796_v48, %v1243_v45  ;;  %3471 = vmatpush3.msra.mxu0 %v3041_v15  ;;  %v1401_v45 = vrot.slane %v4285_v43, %v1400_v10  ;;  %v1497_v17 = vsub.s32 4, %v4279_v28  ;;  %v1504_v48 = vsub.s32 5, %v4279_v28 }
 0x7a7   :  { %3438 = vmatmul.mubr.msk.f32.gmra.mxu0 %vm49_vm1, %v4310_v46  ;;  %3472 = vmatprep.subr.mxu0 %v3800_v0 }
 0x7a8   :  { %v1255_v50 = vmul.f32 %v1252_v27, %v1248_v41  ;;  %3440 = vmatprep.mubr.msk.f32.mxu0 %vm3801_vm0, %v3800_v0  ;;  %3473 = vmatpush3.msra.mxu0 %v3040_v42  ;;  %v1498_v51 = vrot.slane %v4285_v43, %v1497_v17  ;;  %v1505_v54 = vrot.slane %v4285_v43, %v1504_v48 }
 0x7a9   :  { %3474 = vmatprep.subr.mxu0 %v3800_v0 }
 0x7aa   :  { %v4319_v47 = vadd.f32 %v1259_v37, %v1255_v50  ;;  %3475 = vmatpush3.msra.mxu0 %v3039_v44 }
 0x7ab   :  { %3500 = vmatprep.subr.mxu0 %v3800_v0 }
 0x7ac   :  { %3441 = vmatmul.mubr.msk.f32.gmra.mxu0 %vm49_vm1, %v4319_v47 }
 0x7ad   :  { %3476 = vmatprep.mubr.msk.f32.mxu0 %vm3801_vm0, %v3800_v0 }
 0x863   :  { %v1349_v1 = vpop.f32.mrf.mxu0 }
 0x864   :  { %v1350_v3 = vadd.f32 %v3032_v63, %v1349_v1 }
 0x865   :  { %v3436_v4 = vpop.f32.mrf.mxu0 }
 0x866   :  { %v1366_v5 = vmul.f32 0.044715, %v1350_v3  ;;  %v1363_v25 = vmul.f32 0.5, %v1350_v3 }
 0x867   :  { %v1354_v6 = vpop.f32.mrf.mxu0 }
 0x868   :  { %v1369_v7 = vmul.f32 %v1366_v5, %v1350_v3  ;;  %v1355_v8 = vadd.f32 %v3032_v63, %v1354_v6 }
 0x869   :  { %v3439_v2 = vpop.f32.mrf.mxu0 }
 0x86a   :  { %v1372_v9 = vmul.f32 %v1369_v7, %v1350_v3  ;;  %v1367_v11 = vmul.f32 0.044715, %v1355_v8  ;;  %v1364_v36 = vmul.f32 0.5, %v1355_v8 }
 0x86c   :  { %v1375_v12 = vadd.f32 %v1372_v9, %v1350_v3  ;;  %v1370_v13 = vmul.f32 %v1367_v11, %v1355_v8  ;;  %v1359_v14 = vpop.f32.mrf.mxu0 }
 0x86d   :  { %v1360_v16 = vadd.f32 %v3032_v63, %v1359_v14 }
 0x86e   :  { %v1378_v18 = vmul.f32 0.7978846, %v1375_v12  ;;  %v1373_v55 = vmul.f32 %v1370_v13, %v1355_v8  ;;  %v3442_v57 = vpop.f32.mrf.mxu0 }
 0x86f   :  { %v1368_v19 = vmul.f32 0.044715, %v1360_v16  ;;  %v1365_v49 = vmul.f32 0.5, %v1360_v16 }
 0x870   :  { %3734 = vtanh.f32 %v1378_v18  ;;  %v1376_v20 = vadd.f32 %v1373_v55, %v1355_v8 }
 0x871   :  { %v1371_v21 = vmul.f32 %v1368_v19, %v1360_v16 }
 0x872   :  { %v1379_v22 = vmul.f32 0.7978846, %v1376_v20 }
 0x873   :  { %v1374_v59 = vmul.f32 %v1371_v21, %v1360_v16 }
 0x874   :  { %3736 = vtanh.f32 %v1379_v22 }
 0x875   :  { %v1377_v23 = vadd.f32 %v1374_v59, %v1360_v16 }
 0x877   :  { %v1380_v24 = vmul.f32 0.7978846, %v1377_v23 }
 0x879   :  { %3738 = vtanh.f32 %v1380_v24 }
 0x87d   :  { %v3735_v30 = vpop.eup %3734 }
 0x87e   :  { %v1384_v34 = vadd.f32 1.0, %v3735_v30 }
 0x880   :  { %v1387_v27 = vmul.f32 %v1384_v34, %v1363_v25 }
 0x881   :  { %v3737_v35 = vpop.eup %3736 }
 0x882   :  { %3460 = vmatmul.mubr.msk.f32.vlgmr.msra.gmra.mxu1 %vm1402_vm5, %v1387_v27  ;;  %v1385_v33 = vadd.f32 1.0, %v3737_v35 }
 0x883   :  { %3462 = vmatprep.mubr.msk.f32.mxu1 %vm3801_vm0, %v3800_v0 }
 0x884   :  { %v1388_v37 = vmul.f32 %v1385_v33, %v1364_v36 }
 0x886   :  { %v3739_v38 = vpop.eup %3738  ;;  %3463 = vmatmul.mubr.msk.f32.gmra.mxu1 %vm1402_vm5, %v1388_v37 }
 0x887   :  { %3465 = vmatprep.mubr.msk.f32.mxu1 %vm3801_vm0, %v3800_v0  ;;  %v1386_v39 = vadd.f32 1.0, %v3739_v38 }
 0x889   :  { %v1389_v40 = vmul.f32 %v1386_v39, %v1365_v49 }
 0x88b   :  { %3466 = vmatmul.mubr.msk.f32.gmra.mxu1 %vm1402_vm5, %v1389_v40 }
 0x88c   :  { %3491 = vmatprep.mubr.msk.f32.mxu1 %vm3801_vm0, %v3800_v0 }
 0x942   :  { %v1478_v41 = vpop.f32.mrf.mxu1 }
 0x943   :  { %v1479_v50 = vadd.f32 %v1478_v41, %v1401_v45 }
 0x944   :  { %v3461_v52 = vpop.f32.mrf.mxu1 }
 0x945   :  { %v1492_v53 = vadd.f32 %v1479_v50, %v4301_v26 }
 0x946   :  { %v1483_v56 = vpop.f32.mrf.mxu1 }
 0x947   :  { %v1499_v58 = vmul.f32 %v1498_v51, %v1492_v53  ;;  %v1484_v60 = vadd.f32 %v1483_v56, %v1401_v45 }
 0x948   :  { %v3464_v61 = vpop.f32.mrf.mxu1 }
 0x949   :  { %v4398_v62 = vadd.f32 %v1505_v54, %v1499_v58  ;;  %v1493_v63 = vadd.f32 %v1484_v60, %v4310_v46  ;;  %v3798_v60 = vld [vmem:[%s4901_s1 + $0x8] sm:$0xff] }
 0x94b   :  { %v1500_v1 = vmul.f32 %v1498_v51, %v1493_v63  ;;  %v1488_v3 = vpop.f32.mrf.mxu1  ;;  %3477 = vmatmul.mubr.msk.f32.vlgmr.msra.gmra.mxu0 %vm49_vm1, %v4398_v62 }
 0x94c   :  { %v1489_v4 = vadd.f32 %v1488_v3, %v1401_v45  ;;  %3479 = vmatprep.mubr.msk.f32.mxu0 %vm3801_vm0, %v3800_v0 }
 0x94d   :  { %v4405_v26 = vadd.f32 %v1505_v54, %v1500_v1  ;;  %v3467_v43 = vpop.f32.mrf.mxu1 }
 0x94e   :  { %v1494_v5 = vadd.f32 %v1489_v4, %v4319_v47  ;;  %v3044_v47 = vld [vmem:[%s4900_s3 + $0x1] ss:$0 sm:$0xff]  ;;  %v3799_v43 = vld [vmem:[%s4901_s1 + $0x10] sm:$0xff] }
 0x94f   :  { %3480 = vmatmul.mubr.msk.f32.gmra.mxu0 %vm49_vm1, %v4405_v26 }
 0x950   :  { %v1501_v6 = vmul.f32 %v1498_v51, %v1494_v5  ;;  %3482 = vmatprep.mubr.msk.f32.mxu0 %vm3801_vm0, %v3800_v0  ;;  %v3797_v51 = vld [vmem:[%s4901_s1] sm:$0xff] }
 0x952   :  { %v4412_v46 = vadd.f32 %v1505_v54, %v1501_v6 }
 0x954   :  { %3483 = vmatmul.mubr.msk.f32.gmra.mxu0 %vm49_vm1, %v4412_v46 }
 0x955   :  { %3506 = vmatprep.mubr.msk.f32.mxu0 %vm3801_vm0, %v3800_v0 }
 0xa0b   :  { %v1597_v7 = vpop.f32.mrf.mxu0 }
 0xa0c   :  { %v4431_v16 = vadd.f32 %v3044_v47, %v1597_v7 }
 0xa0d   :  { %v3478_v8 = vpop.f32.mrf.mxu0 }
 0xa0f   :  { %v1602_v2 = vpop.f32.mrf.mxu0 }
 0xa10   :  { %v4421_v9 = vadd.f32 %v3044_v47, %v1602_v2 }
 0xa11   :  { %v3481_v11 = vpop.f32.mrf.mxu0 }
 0xa12   :  { %1616 = vrot.lane.b32.xlu1 %v4421_v9, %s3802_s25 }
 0xa14   :  { %v1607_v12 = vpop.f32.mrf.mxu0 }
 0xa15   :  { %v4425_v13 = vadd.f32 %v3044_v47, %v1607_v12 }
 0xa16   :  { %v3484_v14 = vpop.f32.mrf.mxu0 }
 0xa17   :  { %1859 = vrot.lane.b32.xlu1 %v4425_v13, %s3803_s26  ;;  %1618 = vrot.lane.b32.xlu0 %v4425_v13, %s3802_s25 }
 0xa1b   :  { %1855 = vrot.lane.b32.xlu1 %v4431_v16, %s3803_s26  ;;  %1614 = vrot.lane.b32.xlu0 %v4431_v16, %s3802_s25 }
 0xa1f   :  { %2100 = vrot.lane.b32.xlu1 %v4425_v13, %s3804_s27  ;;  %1857 = vrot.lane.b32.xlu0 %v4421_v9, %s3803_s26 }
 0xa23   :  { %2098 = vrot.lane.b32.xlu1 %v4421_v9, %s3804_s27  ;;  %1849 = vrot.lane.b32.xlu0 %v4431_v16, %s3805_s28 }
 0xa27   :  { %2096 = vrot.lane.b32.xlu1 %v4431_v16, %s3804_s27  ;;  %1851 = vrot.lane.b32.xlu0 %v4421_v9, %s3805_s28 }
 0xa2b   :  { %2341 = vrot.lane.b32.xlu1 %v4425_v13, %s3810_s18  ;;  %1853 = vrot.lane.b32.xlu0 %v4425_v13, %s3805_s28 }
 0xa2f   :  { %2339 = vrot.lane.b32.xlu1 %v4421_v9, %s3810_s18  ;;  %2090 = vrot.lane.b32.xlu0 %v4431_v16, %s3806_s29 }
 0xa33   :  { %2337 = vrot.lane.b32.xlu1 %v4431_v16, %s3810_s18  ;;  %2092 = vrot.lane.b32.xlu0 %v4421_v9, %s3806_s29 }
 0xa37   :  { %2333 = vrot.lane.b32.xlu1 %v4421_v9, %s3811_s19  ;;  %2094 = vrot.lane.b32.xlu0 %v4425_v13, %s3806_s29 }
 0xa3b   :  { %1753 = vrot.lane.b32.xlu1 %v4421_v9, %s3807_s30  ;;  %2331 = vrot.lane.b32.xlu0 %v4431_v16, %s3811_s19 }
 0xa3f   :  { %1994 = vrot.lane.b32.xlu1 %v4421_v9, %s3808_s10  ;;  %2335 = vrot.lane.b32.xlu0 %v4425_v13, %s3811_s19 }
 0xa43   :  { %1751 = vrot.lane.b32.xlu0 %v4431_v16, %s3807_s30 }
 0xa47   :  { %1992 = vrot.lane.b32.xlu0 %v4431_v16, %s3808_s10 }
 0xa4b   :  { %1755 = vrot.lane.b32.xlu0 %v4425_v13, %s3807_s30 }
 0xa4f   :  { %1996 = vrot.lane.b32.xlu0 %v4425_v13, %s3808_s10 }
 0xa84   :  { %v1617_v18 = vpop.permute.xlu1 %1616 }
 0xa89   :  { %v1860_v55 = vpop.permute.xlu1 %1859  ;;  %v1619_v57 = vpop.permute.xlu0 %1618 }
 0xa8a   :  { %3486 = vmatpush3.xpose.msk.msra.mxu1 %vm148_vm2, %v1619_v57 }
 0xa8b   :  { %3487 = vmatprep.subr.mxu1 %v3800_v0 }
 0xa8d   :  { %v1615_v19 = vpop.permute.xlu0 %1614  ;;  %v1856_v20 = vpop.permute.xlu1 %1855 }
 0xa8e   :  { %3488 = vmatpush3.xpose.msk.msra.mxu1 %vm148_vm2, %v1617_v18 }
 0xa8f   :  { %3489 = vmatprep.subr.mxu1 %v3800_v0 }
 0xa91   :  { %v1858_v21 = vpop.permute.xlu0 %1857  ;;  %v2101_v22 = vpop.permute.xlu1 %2100 }
 0xa92   :  { %3490 = vmatpush3.xpose.msk.msra.mxu1 %vm148_vm2, %v1615_v19 }
 0xa93   :  { %3515 = vmatprep.subr.mxu1 %v3800_v0 }
 0xa95   :  { %3492 = vmatmul.mubr.msk.f32.vlgmr.msra.gmra.mxu1 %vm148_vm2, %v4431_v16  ;;  %v1850_v59 = vpop.permute.xlu0 %1849  ;;  %v2099_v24 = vpop.permute.xlu1 %2098 }
 0xa96   :  { %3516 = vmatpush3.xpose.msk.msra.mxu1 %vm148_vm2, %v1860_v55  ;;  %3494 = vmatprep.mubr.msk.f32.mxu1 %vm3801_vm0, %v3800_v0 }
 0xa97   :  { %3517 = vmatprep.subr.mxu1 %v3800_v0 }
 0xa99   :  { %3495 = vmatmul.mubr.msk.f32.gmra.mxu1 %vm148_vm2, %v4421_v9  ;;  %v1852_v23 = vpop.permute.xlu0 %1851  ;;  %v2097_v25 = vpop.permute.xlu1 %2096 }
 0xa9a   :  { %3518 = vmatpush3.xpose.msk.msra.mxu1 %vm148_vm2, %v1858_v21  ;;  %3497 = vmatprep.mubr.msk.f32.mxu1 %vm3801_vm0, %v3800_v0 }
 0xa9b   :  { %3519 = vmatprep.subr.mxu1 %v3800_v0 }
 0xa9d   :  { %3498 = vmatmul.mubr.msk.f32.gmra.mxu1 %vm148_vm2, %v4425_v13  ;;  %v1854_v30 = vpop.permute.xlu0 %1853  ;;  %v2342_v35 = vpop.permute.xlu1 %2341 }
 0xa9e   :  { %3520 = vmatpush3.xpose.msk.msra.mxu1 %vm148_vm2, %v1856_v20  ;;  %3521 = vmatprep.mubr.msk.f32.mxu1 %vm3801_vm0, %v3800_v0 }
 0xa9f   :  { %3545 = vmatprep.subr.mxu1 %v3800_v0 }
 0xaa1   :  { %3522 = vmatmul.mubr.msk.f32.vlgmr.msra.gmra.mxu1 %vm148_vm2, %v1850_v59  ;;  %v2091_v34 = vpop.permute.xlu0 %2090  ;;  %v2340_v33 = vpop.permute.xlu1 %2339 }
 0xaa2   :  { %3546 = vmatpush3.xpose.msk.msra.mxu1 %vm148_vm2, %v2101_v22  ;;  %3524 = vmatprep.mubr.msk.f32.mxu1 %vm3801_vm0, %v3800_v0 }
 0xaa3   :  { %3547 = vmatprep.subr.mxu1 %v3800_v0 }
 0xaa5   :  { %3525 = vmatmul.mubr.msk.f32.gmra.mxu1 %vm148_vm2, %v1852_v23  ;;  %v2093_v27 = vpop.permute.xlu0 %2092  ;;  %v2338_v49 = vpop.permute.xlu1 %2337 }
 0xaa6   :  { %3548 = vmatpush3.xpose.msk.msra.mxu1 %vm148_vm2, %v2099_v24  ;;  %3527 = vmatprep.mubr.msk.f32.mxu1 %vm3801_vm0, %v3800_v0 }
 0xaa7   :  { %3549 = vmatprep.subr.mxu1 %v3800_v0 }
 0xaa9   :  { %3528 = vmatmul.mubr.msk.f32.gmra.mxu1 %vm148_vm2, %v1854_v30  ;;  %v2095_v36 = vpop.permute.xlu0 %2094  ;;  %v2334_v40 = vpop.permute.xlu1 %2333 }
 0xaaa   :  { %3550 = vmatpush3.xpose.msk.msra.mxu1 %vm148_vm2, %v2097_v25  ;;  %3551 = vmatprep.mubr.msk.f32.mxu1 %vm3801_vm0, %v3800_v0 }
 0xaab   :  { %3575 = vmatprep.subr.mxu1 %v3800_v0 }
 0xaad   :  { %3552 = vmatmul.mubr.msk.f32.vlgmr.msra.gmra.mxu1 %vm148_vm2, %v2091_v34  ;;  %v2332_v37 = vpop.permute.xlu0 %2331  ;;  %v1754_v44 = vpop.permute.xlu1 %1753 }
 0xaae   :  { %3576 = vmatpush3.xpose.msk.msra.mxu1 %vm148_vm2, %v2342_v35  ;;  %3554 = vmatprep.mubr.msk.f32.mxu1 %vm3801_vm0, %v3800_v0 }
 0xaaf   :  { %3577 = vmatprep.subr.mxu1 %v3800_v0 }
 0xab1   :  { %3555 = vmatmul.mubr.msk.f32.gmra.mxu1 %vm148_vm2, %v2093_v27  ;;  %v2336_v38 = vpop.permute.xlu0 %2335 }
 0xab2   :  { %3578 = vmatpush3.xpose.msk.msra.mxu1 %vm148_vm2, %v2340_v33  ;;  %3557 = vmatprep.mubr.msk.f32.mxu1 %vm3801_vm0, %v3800_v0 }
 0xab3   :  { %3579 = vmatprep.subr.mxu1 %v3800_v0 }
 0xab5   :  { %3558 = vmatmul.mubr.msk.f32.gmra.mxu1 %vm148_vm2, %v2095_v36  ;;  %v1752_v39 = vpop.permute.xlu0 %1751 }
 0xab6   :  { %3580 = vmatpush3.xpose.msk.msra.mxu1 %vm148_vm2, %v2338_v49  ;;  %3581 = vmatprep.mubr.msk.f32.mxu1 %vm3801_vm0, %v3800_v0 }
 0xab7   :  { %3605 = vmatprep.subr.mxu1 %v3800_v0 }
 0xab9   :  { %3582 = vmatmul.mubr.msk.f32.vlgmr.msra.gmra.mxu1 %vm148_vm2, %v2332_v37  ;;  %v4536_v15 = vpop.permute.xlu0 %1992 }
 0xaba   :  { %3584 = vmatprep.mubr.msk.f32.mxu1 %vm3801_vm0, %v3800_v0 }
 0xabd   :  { %3585 = vmatmul.mubr.msk.f32.gmra.mxu1 %vm148_vm2, %v2334_v40  ;;  %v1756_v42 = vpop.permute.xlu0 %1755 }
 0xabe   :  { %3501 = vmatpush3.msra.mxu0 %v1756_v42  ;;  %3587 = vmatprep.mubr.msk.f32.mxu1 %vm3801_vm0, %v3800_v0 }
 0xabf   :  { %3502 = vmatprep.subr.mxu0 %v3800_v0 }
 0xac0   :  { %3503 = vmatpush3.msra.mxu0 %v1754_v44 }
 0xac1   :  { %3504 = vmatprep.subr.mxu0 %v3800_v0  ;;  %3588 = vmatmul.mubr.msk.f32.gmra.mxu1 %vm148_vm2, %v2336_v38 }
 0xac2   :  { %3505 = vmatpush3.msra.mxu0 %v1752_v39  ;;  %3613 = vmatprep.mubr.msk.f32.mxu1 %vm3801_vm0, %v3800_v0 }
 0xac3   :  { %3530 = vmatprep.subr.mxu0 %v3800_v0 }
 0xb55   :  { %v1698_v45 = vpop.f32.mrf.mxu1 }
 0xb56   :  { %v1712_v41 = vmul.f32 0.35355338, %v1698_v45 }
 0xb57   :  { %v3493_v50 = vpop.f32.mrf.mxu1 }
 0xb58   :  { %v4552_v52 = vadd.f32 %v3797_v51, %v1712_v41 }
 0xb59   :  { %v1703_v53 = vpop.f32.mrf.mxu1 }
 0xb5a   :  { %v1713_v54 = vmul.f32 0.35355338, %v1703_v53  ;;  %v1718_v56 = vsel %vm247_vm3, %v4552_v52, -inf }
 0xb5b   :  { %1719 = vmax.xlane.f32.xlu1 %v1718_v56  ;;  %v3496_v58 = vpop.f32.mrf.mxu1 }
 0xb5c   :  { %v4559_v61 = vadd.f32 %v3798_v60, %v1713_v54 }
 0xb5d   :  { %v1708_v63 = vpop.f32.mrf.mxu1 }
 0xb5e   :  { %v1714_v1 = vmul.f32 0.35355338, %v1708_v63  ;;  %v1721_v3 = vsel %vm247_vm3, %v4559_v61, -inf }
 0xb5f   :  { %1722 = vmax.xlane.f32.xlu0 %v1721_v3  ;;  %v3499_v4 = vpop.f32.mrf.mxu1 }
 0xb60   :  { %v4566_v5 = vadd.f32 %v3799_v43, %v1714_v1 }
 0xb61   :  { %v1939_v6 = vpop.f32.mrf.mxu1 }
 0xb62   :  { %v1953_v7 = vmul.f32 0.35355338, %v1939_v6  ;;  %v1724_v8 = vsel %vm247_vm3, %v4566_v5, -inf }
 0xb63   :  { %1725 = vmax.xlane.f32.xlu0 %v1724_v8  ;;  %v3523_v47 = vpop.f32.mrf.mxu1  ;;  %v4614_v8 = vpop.permute.xlu0 %1996 }
 0xb64   :  { %v4570_v2 = vadd.f32 %v3797_v51, %v1953_v7 }
 0xb65   :  { %v1944_v11 = vpop.f32.mrf.mxu1 }
 0xb66   :  { %v1954_v12 = vmul.f32 0.35355338, %v1944_v11  ;;  %v1959_v14 = vsel %vm247_vm3, %v4570_v2, -inf }
 0xb67   :  { %1960 = vmax.xlane.f32.xlu1 %v1959_v14  ;;  %v3526_v18 = vpop.f32.mrf.mxu1 }
 0xb68   :  { %v4574_v55 = vadd.f32 %v3798_v60, %v1954_v12 }
 0xb69   :  { %v1949_v57 = vpop.f32.mrf.mxu1 }
 0xb6a   :  { %v1955_v19 = vmul.f32 0.35355338, %v1949_v57  ;;  %v1962_v20 = vsel %vm247_vm3, %v4574_v55, -inf }
 0xb6b   :  { %1963 = vmax.xlane.f32.xlu0 %v1962_v20  ;;  %v3529_v21 = vpop.f32.mrf.mxu1 }
 0xb6c   :  { %v4578_v22 = vadd.f32 %v3799_v43, %v1955_v19 }
 0xb6d   :  { %v2180_v59 = vpop.f32.mrf.mxu1 }
 0xb6e   :  { %v2194_v23 = vmul.f32 0.35355338, %v2180_v59  ;;  %v1965_v24 = vsel %vm247_vm3, %v4578_v22, -inf }
 0xb6f   :  { %1966 = vmax.xlane.f32.xlu1 %v1965_v24  ;;  %v3553_v30 = vpop.f32.mrf.mxu1 }
 0xb70   :  { %v4582_v25 = vadd.f32 %v3797_v51, %v2194_v23 }
 0xb71   :  { %v2185_v34 = vpop.f32.mrf.mxu1 }
 0xb72   :  { %v2195_v27 = vmul.f32 0.35355338, %v2185_v34  ;;  %v2200_v35 = vsel %vm247_vm3, %v4582_v25, -inf }
 0xb73   :  { %2201 = vmax.xlane.f32.xlu0 %v2200_v35  ;;  %v3556_v36 = vpop.f32.mrf.mxu1 }
 0xb74   :  { %v4586_v33 = vadd.f32 %v3798_v60, %v2195_v27 }
 0xb75   :  { %v2190_v37 = vpop.f32.mrf.mxu1 }
 0xb76   :  { %v2196_v38 = vmul.f32 0.35355338, %v2190_v37  ;;  %v2203_v49 = vsel %vm247_vm3, %v4586_v33, -inf }
 0xb77   :  { %2204 = vmax.xlane.f32.xlu1 %v2203_v49  ;;  %v3559_v39 = vpop.f32.mrf.mxu1 }
 0xb78   :  { %v4590_v40 = vadd.f32 %v3799_v43, %v2196_v38 }
 0xb79   :  { %v2421_v42 = vpop.f32.mrf.mxu1 }
 0xb7a   :  { %v2435_v44 = vmul.f32 0.35355338, %v2421_v42  ;;  %v2206_v45 = vsel %vm247_vm3, %v4590_v40, -inf }
 0xb7b   :  { %2207 = vmax.xlane.f32.xlu0 %v2206_v45  ;;  %v3583_v41 = vpop.f32.mrf.mxu1 }
 0xb7c   :  { %v4594_v50 = vadd.f32 %v3797_v51, %v2435_v44 }
 0xb7d   :  { %v2426_v53 = vpop.f32.mrf.mxu1 }
 0xb7e   :  { %v2436_v54 = vmul.f32 0.35355338, %v2426_v53  ;;  %v2441_v56 = vsel %vm247_vm3, %v4594_v50, -inf }
 0xb7f   :  { %2442 = vmax.xlane.f32.xlu1 %v2441_v56  ;;  %v3586_v58 = vpop.f32.mrf.mxu1 }
 0xb80   :  { %v4598_v63 = vadd.f32 %v3798_v60, %v2436_v54  ;;  %v4612_v60 = vpop.permute.xlu1 %1994 }
 0xb81   :  { %v2431_v1 = vpop.f32.mrf.mxu1 }
 0xb82   :  { %v2444_v3 = vsel %vm247_vm3, %v4598_v63, -inf  ;;  %v2437_v51 = vmul.f32 0.35355338, %v2431_v1 }
 0xb83   :  { %2445 = vmax.xlane.f32.xlu0 %v2444_v3  ;;  %v3589_v4 = vpop.f32.mrf.mxu1 }
 0xb84   :  { %v4606_v6 = vadd.f32 %v3799_v43, %v2437_v51 }
 0xb86   :  { %v2447_v7 = vsel %vm247_vm3, %v4606_v6, -inf }
 0xb90   :  { %2235 = vrot.lane.b32.xlu1 %v4421_v9, %s3809_s11 }
 0xb99   :  { %2237 = vrot.lane.b32.xlu0 %v4425_v13, %s3809_s11 }
 0xbb4   :  { %2448 = vmax.xlane.f32.xlu1 %v2447_v7 }
 0xbc5   :  { %2233 = vrot.lane.b32.xlu1 %v4431_v16, %s3809_s11 }
 0xbe4   :  { %v1720_v47 = vpop.xlane.xlu1 %1719 }
 0xbe5   :  { %v1727_v11 = vsub.f32 %v4552_v52, %v1720_v47 }
 0xbe7   :  { %v1730_v12 = vmul.f32 1.442695, %v1727_v11 }
 0xbe8   :  { %v1723_v14 = vpop.xlane.xlu0 %1722 }
 0xbe9   :  { %3740 = vpow2.f32 %v1730_v12  ;;  %v1728_v43 = vsub.f32 %v4559_v61, %v1723_v14 }
 0xbeb   :  { %v1732_v18 = vmul.f32 1.442695, %v1728_v43 }
 0xbec   :  { %v1726_v57 = vpop.xlane.xlu0 %1725 }
 0xbed   :  { %3742 = vpow2.f32 %v1732_v18  ;;  %v1729_v19 = vsub.f32 %v4566_v5, %v1726_v57 }
 0xbef   :  { %v1734_v20 = vmul.f32 1.442695, %v1729_v19 }
 0xbf0   :  { %v1961_v21 = vpop.xlane.xlu1 %1960 }
 0xbf1   :  { %3744 = vpow2.f32 %v1734_v20  ;;  %v1968_v59 = vsub.f32 %v4570_v2, %v1961_v21 }
 0xbf3   :  { %v1971_v23 = vmul.f32 1.442695, %v1968_v59 }
 0xbf4   :  { %v1964_v24 = vpop.xlane.xlu0 %1963 }
 0xbf5   :  { %3746 = vpow2.f32 %v1971_v23  ;;  %v1969_v52 = vsub.f32 %v4574_v55, %v1964_v24 }
 0xbf6   :  { %v4621_v30 = vpop.eup %3740 }
 0xbf7   :  { %v1973_v34 = vmul.f32 1.442695, %v1969_v52  ;;  %v1736_v61 = vsel %vm247_vm3, %v4621_v30, 0.0 }
 0xbf8   :  { %v1967_v27 = vpop.xlane.xlu1 %1966  ;;  %1737 = vadd.xlane.f32.xlu0 %v1736_v61 }
 0xbf9   :  { %3748 = vpow2.f32 %v1973_v34  ;;  %v1970_v5 = vsub.f32 %v4578_v22, %v1967_v27 }
 0xbfa   :  { %v4626_v35 = vpop.eup %3742 }
 0xbfb   :  { %v1975_v36 = vmul.f32 1.442695, %v1970_v5  ;;  %v1739_v2 = vsel %vm247_vm3, %v4626_v35, 0.0 }
 0xbfc   :  { %1740 = vadd.xlane.f32.xlu1 %v1739_v2  ;;  %v2202_v37 = vpop.xlane.xlu0 %2201 }
 0xbfd   :  { %3750 = vpow2.f32 %v1975_v36  ;;  %v2209_v55 = vsub.f32 %v4582_v25, %v2202_v37 }
 0xbfe   :  { %v4631_v38 = vpop.eup %3744 }
 0xbff   :  { %v2212_v49 = vmul.f32 1.442695, %v2209_v55  ;;  %v1742_v39 = vsel %vm247_vm3, %v4631_v38, 0.0 }
 0xc00   :  { %v2205_v42 = vpop.xlane.xlu1 %2204  ;;  %1743 = vadd.xlane.f32.xlu0 %v1742_v39 }
 0xc01   :  { %3752 = vpow2.f32 %v2212_v49  ;;  %v2210_v22 = vsub.f32 %v4586_v33, %v2205_v42 }
 0xc02   :  { %v4636_v44 = vpop.eup %3746 }
 0xc03   :  { %v2214_v45 = vmul.f32 1.442695, %v2210_v22  ;;  %v1977_v41 = vsel %vm247_vm3, %v4636_v44, 0.0 }
 0xc04   :  { %1978 = vadd.xlane.f32.xlu1 %v1977_v41  ;;  %v2208_v54 = vpop.xlane.xlu0 %2207 }
 0xc05   :  { %3754 = vpow2.f32 %v2214_v45  ;;  %v2211_v57 = vsub.f32 %v4590_v40, %v2208_v54 }
 0xc06   :  { %v4640_v25 = vpop.eup %3748 }
 0xc07   :  { %v1980_v53 = vsel %vm247_vm3, %v4640_v25, 0.0  ;;  %v2216_v19 = vmul.f32 1.442695, %v2211_v57 }
 0xc08   :  { %v2443_v56 = vpop.xlane.xlu1 %2442  ;;  %1981 = vadd.xlane.f32.xlu0 %v1980_v53 }
 0xc09   :  { %v2450_v58 = vsub.f32 %v4594_v50, %v2443_v56 }
 0xc0a   :  { %v4645_v1 = vpop.eup %3750 }
 0xc0b   :  { %v2453_v33 = vmul.f32 1.442695, %v2450_v58  ;;  %v1983_v3 = vsel %vm247_vm3, %v4645_v1, 0.0 }
 0xc0c   :  { %1984 = vadd.xlane.f32.xlu1 %v1983_v3  ;;  %v2446_v4 = vpop.xlane.xlu0 %2445  ;;  %v2236_v21 = vpop.permute.xlu1 %2235 }
 0xc0d   :  { %3756 = vpow2.f32 %v2453_v33  ;;  %v2451_v51 = vsub.f32 %v4598_v63, %v2446_v4 }
 0xc0e   :  { %v4650_v7 = vpop.eup %3752 }
 0xc0f   :  { %v2455_v47 = vmul.f32 1.442695, %v2451_v51  ;;  %v2218_v11 = vsel %vm247_vm3, %v4650_v7, 0.0 }
 0xc10   :  { %2219 = vadd.xlane.f32.xlu1 %v2218_v11 }
 0xc11   :  { %3758 = vpow2.f32 %v2455_v47 }
 0xc12   :  { %v4654_v50 = vpop.eup %3754  ;;  %3760 = vpow2.f32 %v2216_v19 }
 0xc13   :  { %v2221_v12 = vsel %vm247_vm3, %v4654_v50, 0.0 }
 0xc14   :  { %2222 = vadd.xlane.f32.xlu1 %v2221_v12 }
 0xc1a   :  { %v4658_v14 = vpop.eup %3756 }
 0xc1b   :  { %v2459_v43 = vsel %vm247_vm3, %v4658_v14, 0.0 }
 0xc1c   :  { %2460 = vadd.xlane.f32.xlu1 %v2459_v43 }
 0xc1e   :  { %v4662_v63 = vpop.eup %3758  ;;  %2478 = vrot.lane.b32.xlu0 %v4425_v13, %s3812_s20 }
 0xc1f   :  { %v2462_v18 = vsel %vm247_vm3, %v4662_v63, 0.0  ;;  %v4671_v20 = vpop.eup %3760 }
 0xc20   :  { %2463 = vadd.xlane.f32.xlu1 %v2462_v18  ;;  %v2224_v59 = vsel %vm247_vm3, %v4671_v20, 0.0 }
 0xc31   :  { %2476 = vrot.lane.b32.xlu1 %v4421_v9, %s3812_s20  ;;  %v2238_v9 = vpop.permute.xlu0 %2237 }
 0xc3d   :  { %v2449_v23 = vpop.xlane.xlu1 %2448  ;;  %2225 = vadd.xlane.f32.xlu0 %v2224_v59 }
 0xc3e   :  { %v2452_v13 = vsub.f32 %v4606_v6, %v2449_v23 }
 0xc40   :  { %v2457_v24 = vmul.f32 1.442695, %v2452_v13 }
 0xc41   :  { %v2234_v34 = vpop.permute.xlu1 %2233 }
 0xc42   :  { %3762 = vpow2.f32 %v2457_v24  ;;  %v3088_v24 = vld [vmem:[%s4902_s4 + $0x38] sm:$0xff] }
 0xc43   :  { %3606 = vmatpush3.msra.mxu1 %v3088_v24 }
 0xc44   :  { %3607 = vmatprep.subr.mxu1 %v3800_v0 }
 0xc4f   :  { %v4676_v52 = vpop.eup %3762 }
 0xc50   :  { %v2465_v40 = vsel %vm247_vm3, %v4676_v52, 0.0 }
 0xc51   :  { %2466 = vadd.xlane.f32.xlu0 %v2465_v40 }
 0xc67   :  { %2474 = vrot.lane.b32.xlu0 %v4431_v16, %s3812_s20 }
 0xc81   :  { %v1738_v61 = vpop.xlane.xlu0 %1737 }
 0xc82   :  { %3764 = vrcp.f32 %v1738_v61 }
 0xc85   :  { %v1741_v27 = vpop.xlane.xlu1 %1740 }
 0xc86   :  { %3766 = vrcp.f32 %v1741_v27 }
 0xc89   :  { %v1744_v5 = vpop.xlane.xlu0 %1743 }
 0xc8a   :  { %3768 = vrcp.f32 %v1744_v5 }
 0xc8d   :  { %v1979_v6 = vpop.xlane.xlu1 %1978 }
 0xc8e   :  { %3770 = vrcp.f32 %v1979_v6 }
 0xc8f   :  { %v3765_v36 = vpop.eup %3764 }
 0xc90   :  { %v1748_v2 = vmul.f32 %v3765_v36, %v4621_v30 }
 0xc91   :  { %v1982_v37 = vpop.xlane.xlu0 %1981 }
 0xc92   :  { %3772 = vrcp.f32 %v1982_v37  ;;  %3507 = vmatmul.mubr.msk.f32.vlgmr.msra.gmra.mxu0 %vm247_vm3, %v1748_v2  ;;  %v3085_v2 = vld [vmem:[%s4902_s4 + $0x20] sm:$0xff] }
 0xc93   :  { %v3767_v55 = vpop.eup %3766  ;;  %3531 = vmatpush3.msra.mxu0 %v4614_v8  ;;  %3509 = vmatprep.mubr.msk.f32.mxu0 %vm3801_vm0, %v3800_v0 }
 0xc94   :  { %3532 = vmatprep.subr.mxu0 %v3800_v0  ;;  %v1749_v16 = vmul.f32 %v3767_v55, %v4626_v35 }
 0xc95   :  { %3533 = vmatpush3.msra.mxu0 %v4612_v60  ;;  %v1985_v49 = vpop.xlane.xlu1 %1984  ;;  %v2479_v54 = vpop.permute.xlu0 %2478 }
 0xc96   :  { %3774 = vrcp.f32 %v1985_v49  ;;  %3534 = vmatprep.subr.mxu0 %v3800_v0  ;;  %3510 = vmatmul.mubr.msk.f32.gmra.mxu0 %vm247_vm3, %v1749_v16 }
 0xc97   :  { %v3769_v30 = vpop.eup %3768  ;;  %3535 = vmatpush3.msra.mxu0 %v4536_v15  ;;  %3512 = vmatprep.mubr.msk.f32.mxu0 %vm3801_vm0, %v3800_v0 }
 0xc98   :  { %v1750_v8 = vmul.f32 %v3769_v30, %v4631_v38  ;;  %3560 = vmatprep.subr.mxu0 %v3800_v0 }
 0xc99   :  { %v2220_v39 = vpop.xlane.xlu1 %2219 }
 0xc9a   :  { %3776 = vrcp.f32 %v2220_v39  ;;  %3513 = vmatmul.mubr.msk.f32.gmra.mxu0 %vm247_vm3, %v1750_v8 }
 0xc9b   :  { %v3771_v60 = vpop.eup %3770  ;;  %3536 = vmatprep.mubr.msk.f32.mxu0 %vm3801_vm0, %v3800_v0 }
 0xc9c   :  { %v1989_v35 = vmul.f32 %v3771_v60, %v4636_v44 }
 0xc9d   :  { %v2223_v42 = vpop.xlane.xlu1 %2222 }
 0xc9e   :  { %3778 = vrcp.f32 %v2223_v42  ;;  %3537 = vmatmul.mubr.msk.f32.vlgmr.msra.gmra.mxu0 %vm247_vm3, %v1989_v35 }
 0xc9f   :  { %v3773_v15 = vpop.eup %3772  ;;  %3561 = vmatpush3.msra.mxu0 %v2238_v9  ;;  %3539 = vmatprep.mubr.msk.f32.mxu0 %vm3801_vm0, %v3800_v0  ;;  %v3086_v9 = vld [vmem:[%s4902_s4 + $0x28] sm:$0xff] }
 0xca0   :  { %3562 = vmatprep.subr.mxu0 %v3800_v0  ;;  %v1990_v38 = vmul.f32 %v3773_v15, %v4640_v25 }
 0xca1   :  { %3563 = vmatpush3.msra.mxu0 %v2236_v21 }
 0xca2   :  { %3564 = vmatprep.subr.mxu0 %v3800_v0  ;;  %3540 = vmatmul.mubr.msk.f32.gmra.mxu0 %vm247_vm3, %v1990_v38 }
 0xca3   :  { %v3775_v22 = vpop.eup %3774  ;;  %3565 = vmatpush3.msra.mxu0 %v2234_v34  ;;  %3542 = vmatprep.mubr.msk.f32.mxu0 %vm3801_vm0, %v3800_v0 }
 0xca4   :  { %v1991_v44 = vmul.f32 %v3775_v22, %v4645_v1  ;;  %3590 = vmatprep.subr.mxu0 %v3800_v0 }
 0xca5   :  { %v2461_v45 = vpop.xlane.xlu1 %2460 }
 0xca6   :  { %3543 = vmatmul.mubr.msk.f32.gmra.mxu0 %vm247_vm3, %v1991_v44 }
 0xca7   :  { %v3777_v41 = vpop.eup %3776  ;;  %3566 = vmatprep.mubr.msk.f32.mxu0 %vm3801_vm0, %v3800_v0 }
 0xca8   :  { %v2230_v25 = vmul.f32 %v3777_v41, %v4650_v7 }
 0xca9   :  { %v2464_v53 = vpop.xlane.xlu1 %2463 }
 0xcaa   :  { %3567 = vmatmul.mubr.msk.f32.vlgmr.msra.gmra.mxu0 %vm247_vm3, %v2230_v25 }
 0xcab   :  { %v3779_v56 = vpop.eup %3778  ;;  %3591 = vmatpush3.msra.mxu0 %v2479_v54  ;;  %3569 = vmatprep.mubr.msk.f32.mxu0 %vm3801_vm0, %v3800_v0 }
 0xcac   :  { %3592 = vmatprep.subr.mxu0 %v3800_v0  ;;  %v2231_v58 = vmul.f32 %v3779_v56, %v4654_v50 }
 0xcad   :  { %v2477_v1 = vpop.permute.xlu1 %2476 }
 0xcae   :  { %3570 = vmatmul.mubr.msk.f32.gmra.mxu0 %vm247_vm3, %v2231_v58 }
 0xcaf   :  { %3593 = vmatpush3.msra.mxu0 %v2477_v1  ;;  %3572 = vmatprep.mubr.msk.f32.mxu0 %vm3801_vm0, %v3800_v0 }
 0xcb0   :  { %3594 = vmatprep.subr.mxu0 %v3800_v0 }
 0xcc6   :  { %v2226_v33 = vpop.xlane.xlu0 %2225 }
 0xcc7   :  { %3780 = vrcp.f32 %v2226_v33 }
 0xcc8   :  { %3782 = vrcp.f32 %v2461_v45 }
 0xcc9   :  { %3784 = vrcp.f32 %v2464_v53 }
 0xcd4   :  { %v3781_v3 = vpop.eup %3780 }
 0xcd5   :  { %v2232_v4 = vmul.f32 %v3781_v3, %v4671_v20  ;;  %v3783_v7 = vpop.eup %3782 }
 0xcd6   :  { %v2471_v47 = vmul.f32 %v3783_v7, %v4658_v14  ;;  %v3785_v50 = vpop.eup %3784  ;;  %v3095_v7 = vld [vmem:[%s4903_s5 + $0x38] sm:$0xff] }
 0xcd7   :  { %3573 = vmatmul.mubr.msk.f32.gmra.mxu0 %vm247_vm3, %v2232_v4  ;;  %v2472_v12 = vmul.f32 %v3785_v50, %v4662_v63  ;;  %v3092_v50 = vld [vmem:[%s4903_s5 + $0x20] sm:$0xff] }
 0xcd8   :  { %3596 = vmatprep.mubr.msk.f32.mxu0 %vm3801_vm0, %v3800_v0 }
 0xcda   :  { %v2467_v51 = vpop.xlane.xlu0 %2466 }
 0xcdb   :  { %3786 = vrcp.f32 %v2467_v51 }
 0xcde   :  { %v2475_v11 = vpop.permute.xlu0 %2474 }
 0xcdf   :  { %3595 = vmatpush3.msra.mxu0 %v2475_v11  ;;  %v3093_v11 = vld [vmem:[%s4903_s5 + $0x28] sm:$0xff] }
 0xce0   :  { %3597 = vmatmul.mubr.msk.f32.vlgmr.msra.gmra.mxu0 %vm247_vm3, %v2471_v47  ;;  %3622 = vmatprep.subr.mxu0 %v3800_v0  ;;  %v3094_v47 = vld [vmem:[%s4903_s5 + $0x30] sm:$0xff] }
 0xce1   :  { %3599 = vmatprep.mubr.msk.f32.mxu0 %vm3801_vm0, %v3800_v0  ;;  %3623 = vmatpush3.msra.mxu0 %v3095_v7 }
 0xce2   :  { %3624 = vmatprep.subr.mxu0 %v3800_v0 }
 0xce3   :  { %3625 = vmatpush3.msra.mxu0 %v3094_v47 }
 0xce4   :  { %3600 = vmatmul.mubr.msk.f32.gmra.mxu0 %vm247_vm3, %v2472_v12  ;;  %3626 = vmatprep.subr.mxu0 %v3800_v0  ;;  %v4803_v12 = vld [vmem:[%s4904_s8 + $0x8] sm:$0x3f] }
 0xce5   :  { %3602 = vmatprep.mubr.msk.f32.mxu0 %vm3801_vm0, %v3800_v0  ;;  %3627 = vmatpush3.msra.mxu0 %v3093_v11 }
 0xce6   :  { %3628 = vmatprep.subr.mxu0 %v3800_v0 }
 0xce7   :  { %3629 = vmatpush3.msra.mxu0 %v3092_v50 }
 0xce8   :  { %v3787_v43 = vpop.eup %3786 }
 0xce9   :  { %v2473_v14 = vmul.f32 %v3787_v43, %v4676_v52  ;;  %v3087_v52 = vld [vmem:[%s4902_s4 + $0x30] sm:$0xff]  ;;  %v2627_v43 = vrot.slane %v4803_v12, %v1155_v29 }
 0xcea   :  { %3608 = vmatpush3.msra.mxu1 %v3087_v52 }
 0xceb   :  { %3603 = vmatmul.mubr.msk.f32.gmra.mxu0 %vm247_vm3, %v2473_v14  ;;  %3609 = vmatprep.subr.mxu1 %v3800_v0 }
 0xcec   :  { %3630 = vmatprep.mubr.msk.f32.mxu0 %vm3801_vm0, %v3800_v0  ;;  %3610 = vmatpush3.msra.mxu1 %v3086_v9 }
 0xced   :  { %3611 = vmatprep.subr.mxu1 %v3800_v0 }
 0xcee   :  { %3612 = vmatpush3.msra.mxu1 %v3085_v2  ;;  %v3102_v2 = vld [vmem:[%s4905_s7 + $0x48] sm:$0xff] }
 0xcef   :  { %3639 = vmatprep.subr.mxu1 %v3800_v0 }
 0xd52   :  { %v1835_v18 = vpop.f32.mrf.mxu0 }
 0xd54   :  { %v3508_v57 = vpop.f32.mrf.mxu0 }
 0xd55   :  { %v2723_v57 = vrot.slane %v4803_v12, %v1251_v31 }
 0xd56   :  { %v1840_v19 = vpop.f32.mrf.mxu0 }
 0xd58   :  { %v3511_v20 = vpop.f32.mrf.mxu0 }
 0xd5a   :  { %v1845_v21 = vpop.f32.mrf.mxu0 }
 0xd5c   :  { %v3514_v59 = vpop.f32.mrf.mxu0 }
 0xd5e   :  { %v2076_v63 = vpop.f32.mrf.mxu0 }
 0xd5f   :  { %2575 = vrot.lane.b32.xlu1 %v2076_v63, %s3813_s21 }
 0xd60   :  { %v3538_v23 = vpop.f32.mrf.mxu0 }
 0xd62   :  { %v2081_v13 = vpop.f32.mrf.mxu0 }
 0xd63   :  { %2577 = vrot.lane.b32.xlu0 %v2081_v13, %s3813_s21 }
 0xd64   :  { %v3541_v40 = vpop.f32.mrf.mxu0 }
 0xd66   :  { %v2086_v34 = vpop.f32.mrf.mxu0 }
 0xd68   :  { %v3544_v61 = vpop.f32.mrf.mxu0 }
 0xd69   :  { %v3108_v61 = vld [vmem:[%s4905_s7 + $0x78] sm:$0xff] }
 0xd6a   :  { %v2317_v27 = vpop.f32.mrf.mxu0 }
 0xd6b   :  { %2587 = vrot.lane.b32.xlu0 %v2317_v27, %s3814_s22  ;;  %v3106_v27 = vld [vmem:[%s4905_s7 + $0x68] sm:$0xff] }
 0xd6c   :  { %v3568_v5 = vpop.f32.mrf.mxu0 }
 0xd6d   :  { %v3105_v5 = vld [vmem:[%s4905_s7 + $0x60] sm:$0xff] }
 0xd6e   :  { %v2322_v6 = vpop.f32.mrf.mxu0 }
 0xd6f   :  { %2589 = vrot.lane.b32.xlu1 %v2322_v6, %s3814_s22  ;;  %v3104_v6 = vld [vmem:[%s4905_s7 + $0x58] sm:$0xff] }
 0xd70   :  { %v3571_v36 = vpop.f32.mrf.mxu0 }
 0xd71   :  { %v3103_v36 = vld [vmem:[%s4905_s7 + $0x50] sm:$0xff] }
 0xd97   :  { %v2327_v37 = vpop.f32.mrf.mxu0 }
 0xd99   :  { %v3574_v55 = vpop.f32.mrf.mxu0 }
 0xd9a   :  { %v3097_v55 = vld [vmem:[%s4906_s6 + $0x1] ss:$0 sm:$0xff] }
 0xda0   :  { %v2558_v16 = vpop.f32.mrf.mxu0 }
 0xda1   :  { %2599 = vrot.lane.b32.xlu1 %v2558_v16, %s3815_s12 }
 0xda2   :  { %v3598_v49 = vpop.f32.mrf.mxu0 }
 0xda4   :  { %v2563_v30 = vpop.f32.mrf.mxu0 }
 0xda5   :  { %2579 = vrot.lane.b32.xlu1 %v2086_v34, %s3813_s21  ;;  %2601 = vrot.lane.b32.xlu0 %v2563_v30, %s3815_s12 }
 0xda6   :  { %v3601_v8 = vpop.f32.mrf.mxu0 }
 0xda9   :  { %2591 = vrot.lane.b32.xlu0 %v2327_v37, %s3814_s22  ;;  %v3101_v37 = vld [vmem:[%s4905_s7 + $0x40] sm:$0xff] }
 0xdab   :  { %v2568_v39 = vpop.f32.mrf.mxu0 }
 0xdac   :  { %2603 = vrot.lane.b32.xlu1 %v2568_v39, %s3815_s12 }
 0xdad   :  { %v3604_v60 = vpop.f32.mrf.mxu0 }
 0xdd1   :  { %v2576_v35 = vpop.permute.xlu1 %2575 }
 0xdd2   :  { %v2608_v22 = vsel %vm148_vm2, %v1835_v18, %v2576_v35 }
 0xdd5   :  { %v2578_v42 = vpop.permute.xlu0 %2577 }
 0xdd6   :  { %v2609_v25 = vsel %vm148_vm2, %v1840_v19, %v2578_v42 }
 0xddd   :  { %v2588_v38 = vpop.permute.xlu0 %2587 }
 0xdde   :  { %v2611_v44 = vsel %vm1141_vm4, %v2608_v22, %v2588_v38 }
 0xde1   :  { %v2590_v15 = vpop.permute.xlu1 %2589 }
 0xde2   :  { %v2612_v53 = vsel %vm1141_vm4, %v2609_v25, %v2590_v15 }
 0xe13   :  { %v2600_v45 = vpop.permute.xlu1 %2599 }
 0xe14   :  { %v2614_v41 = vsel %vm247_vm3, %v2611_v44, %v2600_v45 }
 0xe15   :  { %3614 = vmatmul.mubr.msk.f32.vlgmr.msra.gmra.mxu1 %vm49_vm1, %v2614_v41 }
 0xe16   :  { %3616 = vmatprep.mubr.msk.f32.mxu1 %vm3801_vm0, %v3800_v0  ;;  %3640 = vmatpush3.msra.mxu1 %v3108_v61 }
 0xe17   :  { %v2602_v54 = vpop.permute.xlu0 %2601  ;;  %v2580_v58 = vpop.permute.xlu1 %2579  ;;  %3641 = vmatprep.subr.mxu1 %v3800_v0 }
 0xe18   :  { %v2615_v56 = vsel %vm247_vm3, %v2612_v53, %v2602_v54  ;;  %v2610_v33 = vsel %vm148_vm2, %v1845_v21, %v2580_v58  ;;  %v2730_v21 = vrot.slane %v4803_v12, %v1258_v32 }
 0xe19   :  { %3617 = vmatmul.mubr.msk.f32.gmra.mxu1 %vm49_vm1, %v2615_v56 }
 0xe1a   :  { %3619 = vmatprep.mubr.msk.f32.mxu1 %vm3801_vm0, %v3800_v0 }
 0xe1b   :  { %v2592_v1 = vpop.permute.xlu0 %2591 }
 0xe1c   :  { %v2613_v3 = vsel %vm1141_vm4, %v2610_v33, %v2592_v1 }
 0xe1e   :  { %v2604_v4 = vpop.permute.xlu1 %2603 }
 0xe1f   :  { %v2616_v51 = vsel %vm247_vm3, %v2613_v3, %v2604_v4 }
 0xe20   :  { %3620 = vmatmul.mubr.msk.f32.gmra.mxu1 %vm49_vm1, %v2616_v51 }
 0xe21   :  { %3655 = vmatprep.mubr.msk.f32.mxu1 %vm3801_vm0, %v3800_v0 }
 0xed5   :  { %v2703_v14 = vpop.f32.mrf.mxu1 }
 0xed6   :  { %v2704_v18 = vadd.f32 %v2703_v14, %v2627_v43 }
 0xed7   :  { %v3615_v19 = vpop.f32.mrf.mxu1 }
 0xed8   :  { %v2717_v20 = vadd.f32 %v2704_v18, %v4398_v62 }
 0xed9   :  { %v2708_v59 = vpop.f32.mrf.mxu1 }
 0xeda   :  { %v2724_v63 = vmul.f32 %v2723_v57, %v2717_v20  ;;  %v2709_v23 = vadd.f32 %v2708_v59, %v2627_v43 }
 0xedb   :  { %v3618_v13 = vpop.f32.mrf.mxu1 }
 0xedc   :  { %v4815_v24 = vadd.f32 %v2730_v21, %v2724_v63  ;;  %v2718_v29 = vadd.f32 %v2709_v23, %v4405_v26  ;;  %v2875_v63 = vrot.slane %v4803_v12, %v1400_v10 }
 0xede   :  { %v2725_v52 = vmul.f32 %v2723_v57, %v2718_v29  ;;  %3631 = vmatmul.mubr.msk.f32.vlgmr.msra.gmra.mxu0 %vm49_vm1, %v4815_v24  ;;  %v2971_v29 = vrot.slane %v4803_v12, %v1497_v17 }
 0xedf   :  { %3633 = vmatprep.mubr.msk.f32.mxu0 %vm3801_vm0, %v3800_v0 }
 0xee0   :  { %v4822_v31 = vadd.f32 %v2730_v21, %v2725_v52  ;;  %v2713_v62 = vpop.f32.mrf.mxu1 }
 0xee1   :  { %v2714_v40 = vadd.f32 %v2713_v62, %v2627_v43 }
 0xee2   :  { %v3621_v32 = vpop.f32.mrf.mxu1  ;;  %3634 = vmatmul.mubr.msk.f32.gmra.mxu0 %vm49_vm1, %v4822_v31 }
 0xee3   :  { %v2719_v9 = vadd.f32 %v2714_v40, %v4412_v46  ;;  %3636 = vmatprep.mubr.msk.f32.mxu0 %vm3801_vm0, %v3800_v0  ;;  %v3107_v46 = vld [vmem:[%s4905_s7 + $0x70] sm:$0xff] }
 0xee4   :  { %3642 = vmatpush3.msra.mxu1 %v3107_v46 }
 0xee5   :  { %v2726_v26 = vmul.f32 %v2723_v57, %v2719_v9  ;;  %3643 = vmatprep.subr.mxu1 %v3800_v0 }
 0xee6   :  { %3644 = vmatpush3.msra.mxu1 %v3106_v27 }
 0xee7   :  { %v4829_v34 = vadd.f32 %v2730_v21, %v2726_v26  ;;  %3645 = vmatprep.subr.mxu1 %v3800_v0 }
 0xee8   :  { %3646 = vmatpush3.msra.mxu1 %v3105_v5 }
 0xee9   :  { %3637 = vmatmul.mubr.msk.f32.gmra.mxu0 %vm49_vm1, %v4829_v34  ;;  %3647 = vmatprep.subr.mxu1 %v3800_v0 }
 0xeea   :  { %3648 = vmatpush3.msra.mxu1 %v3104_v6 }
 0xeeb   :  { %3649 = vmatprep.subr.mxu1 %v3800_v0 }
 0xeec   :  { %3650 = vmatpush3.msra.mxu1 %v3103_v36 }
 0xeed   :  { %3651 = vmatprep.subr.mxu1 %v3800_v0 }
 0xeee   :  { %3652 = vmatpush3.msra.mxu1 %v3102_v2 }
 0xeef   :  { %3653 = vmatprep.subr.mxu1 %v3800_v0 }
 0xef0   :  { %3654 = vmatpush3.msra.mxu1 %v3101_v37 }
 0xf9e   :  { %v2822_v16 = vpop.f32.mrf.mxu0 }
 0xf9f   :  { %v2823_v49 = vadd.f32 %v3097_v55, %v2822_v16 }
 0xfa0   :  { %v3632_v30 = vpop.f32.mrf.mxu0 }
 0xfa1   :  { %v2839_v8 = vmul.f32 0.044715, %v2823_v49  ;;  %v2836_v47 = vmul.f32 0.5, %v2823_v49 }
 0xfa2   :  { %v2827_v39 = vpop.f32.mrf.mxu0 }
 0xfa3   :  { %v2842_v60 = vmul.f32 %v2839_v8, %v2823_v49  ;;  %v2828_v35 = vadd.f32 %v3097_v55, %v2827_v39 }
 0xfa4   :  { %v3635_v42 = vpop.f32.mrf.mxu0 }
 0xfa5   :  { %v2845_v15 = vmul.f32 %v2842_v60, %v2823_v49  ;;  %v2840_v38 = vmul.f32 0.044715, %v2828_v35  ;;  %v2837_v14 = vmul.f32 0.5, %v2828_v35 }
 0xfa7   :  { %v2848_v22 = vadd.f32 %v2845_v15, %v2823_v49  ;;  %v2843_v44 = vmul.f32 %v2840_v38, %v2828_v35 }
 0xfa9   :  { %v2851_v45 = vmul.f32 0.7978846, %v2848_v22  ;;  %v2846_v41 = vmul.f32 %v2843_v44, %v2828_v35  ;;  %v2832_v25 = vpop.f32.mrf.mxu0 }
 0xfaa   :  { %v2833_v53 = vadd.f32 %v3097_v55, %v2832_v25 }
 0xfab   :  { %3788 = vtanh.f32 %v2851_v45  ;;  %v2849_v54 = vadd.f32 %v2846_v41, %v2828_v35  ;;  %v3638_v56 = vpop.f32.mrf.mxu0 }
 0xfac   :  { %v2841_v58 = vmul.f32 0.044715, %v2833_v53  ;;  %v2838_v20 = vmul.f32 0.5, %v2833_v53 }
 0xfad   :  { %v2852_v1 = vmul.f32 0.7978846, %v2849_v54 }
 0xfae   :  { %v2844_v33 = vmul.f32 %v2841_v58, %v2833_v53 }
 0xfaf   :  { %3790 = vtanh.f32 %v2852_v1 }
 0xfb0   :  { %v2847_v3 = vmul.f32 %v2844_v33, %v2833_v53 }
 0xfb2   :  { %v2850_v4 = vadd.f32 %v2847_v3, %v2833_v53 }
 0xfb4   :  { %v2853_v51 = vmul.f32 0.7978846, %v2850_v4 }
 0xfb6   :  { %3792 = vtanh.f32 %v2853_v51 }
 0xfb8   :  { %v3789_v7 = vpop.eup %3788 }
 0xfb9   :  { %v2857_v11 = vadd.f32 1.0, %v3789_v7 }
 0xfbb   :  { %v2860_v50 = vmul.f32 %v2857_v11, %v2836_v47 }
 0xfbc   :  { %v3791_v43 = vpop.eup %3790 }
 0xfbd   :  { %3656 = vmatmul.mubr.msk.f32.vlgmr.msra.gmra.mxu1 %vm1402_vm5, %v2860_v50  ;;  %v2858_v18 = vadd.f32 1.0, %v3791_v43 }
 0xfbe   :  { %3658 = vmatprep.mubr.msk.f32.mxu1 %vm3801_vm0, %v3800_v0 }
 0xfbf   :  { %v2861_v57 = vmul.f32 %v2858_v18, %v2837_v14 }
 0xfc1   :  { %3659 = vmatmul.mubr.msk.f32.gmra.mxu1 %vm1402_vm5, %v2861_v57 }
 0xfc2   :  { %3661 = vmatprep.mubr.msk.f32.mxu1 %vm3801_vm0, %v3800_v0  ;;  %v2978_v0 = vrot.slane %v4803_v12, %v1504_v48 }
 0xfc3   :  { %v3793_v19 = vpop.eup %3792 }
 0xfc4   :  { %v2859_v21 = vadd.f32 1.0, %v3793_v19 }
 0xfc6   :  { %v2862_v59 = vmul.f32 %v2859_v21, %v2838_v20 }
 0xfc8   :  { %3662 = vmatmul.mubr.msk.f32.gmra.mxu1 %vm1402_vm5, %v2862_v59 }
0x107d   :  { %v2951_v23 = vpop.f32.mrf.mxu1 }
0x107e   :  { %v2952_v13 = vadd.f32 %v2951_v23, %v2875_v63 }
0x107f   :  { %v3657_v52 = vpop.f32.mrf.mxu1 }
0x1080   :  { %v2965_v62 = vadd.f32 %v2952_v13, %v4815_v24 }
0x1081   :  { %v2956_v40 = vpop.f32.mrf.mxu1 }
0x1082   :  { %v2972_v32 = vmul.f32 %v2971_v29, %v2965_v62  ;;  %v2957_v9 = vadd.f32 %v2956_v40, %v2875_v63 }
0x1083   :  { %v3660_v26 = vpop.f32.mrf.mxu1 }
0x1084   :  { %v2979_v61 = vadd.f32 %v2978_v0, %v2972_v32  ;;  %v2966_v10 = vadd.f32 %v2957_v9, %v4822_v31 }
0x1086   :  { %2982 = vst.msk [vmem:[%s4907_s9] sm:$0xff] %vm49_vm1, %v2979_v61  ;;  %v2973_v17 = vmul.f32 %v2971_v29, %v2966_v10 }
0x1088   :  { %v2980_v46 = vadd.f32 %v2978_v0, %v2973_v17  ;;  %v2961_v27 = vpop.f32.mrf.mxu1 }
0x1089   :  { %v2962_v24 = vadd.f32 %v2961_v27, %v2875_v63 }
0x108a   :  { %2983 = vst.msk [vmem:[%s4907_s9 + $0x8] sm:$0xff] %vm49_vm1, %v2980_v46  ;;  %v3663_v28 = vpop.f32.mrf.mxu1 }
0x108b   :  { %v2967_v48 = vadd.f32 %v2962_v24, %v4829_v34 }
0x108d   :  { %v2974_v12 = vmul.f32 %v2971_v29, %v2967_v48 }
0x108f   :  { %v2981_v5 = vadd.f32 %v2978_v0, %v2974_v12 }
0x1091   :  { %2984 = vst.msk [vmem:[%s4907_s9 + $0x10] sm:$0xff] %vm49_vm1, %v2981_v5 }

</bundles_post_ra>
